<compile_context>
chip_gen: v5e
topology: v5e:2x2
jax: 0.10.0
libtpu: 0.0.40
codegen_flags: <defaults>
</compile_context>

<pallas_src>
import functools

import jax
import jax.numpy as jnp
from jax import lax
from jax.experimental import pallas as pl
from jax.experimental.pallas import tpu as pltpu

# ---- small synthetic CLIP-text config (real one: vocab=49408, D=768, L=12) ----
VOCAB = 100
MAX_LEN = 8          # max_length (sequence length, padded). Real CLIP: 77
D = 128              # hidden size (lane-dense: multiple of 128)
H = 2                # attention heads
DH = D // H          # head dim (64, same as real CLIP-L)
MLP = 4 * D          # intermediate size
LAYERS = 2
EPS = 1e-5
MASK_VAL = -1e30     # finite sentinel (avoids -inf propagation)


def _layer_norm(x, w, b):
    mu = jnp.mean(x, axis=-1, keepdims=True)
    var = jnp.mean((x - mu) ** 2, axis=-1, keepdims=True)
    return (x - mu) * lax.rsqrt(var + EPS) * w + b


def fused_clip_kernel(x_ref,
                      ln1w_ref, ln1b_ref, qkvw_ref, qkvb_ref, ow_ref, ob_ref,
                      ln2w_ref, ln2b_ref, f1w_ref, f1b_ref, f2w_ref, f2b_ref,
                      fw_ref, fb_ref,
                      out_ref, *, batch, seq):
    """One grid step = one CLIP encoder layer over the whole (B*S, D) slab.

    The activation lives in the (VMEM-resident) output block across the layer
    grid axis; the final layer norm is fused into the last grid step.
    """
    layer = pl.program_id(0)
    n_layers = pl.num_programs(0)

    @pl.when(layer == 0)
    def _():
        out_ref[...] = x_ref[...]

    x = out_ref[...]                                 # (M, D) f32, VMEM-resident

    # (S, S) additive causal bias, generated in-kernel (no HBM traffic).
    row = lax.broadcasted_iota(jnp.int32, (seq, seq), 0)
    col = lax.broadcasted_iota(jnp.int32, (seq, seq), 1)
    causal = jnp.where(col <= row, 0.0, MASK_VAL).astype(jnp.float32)

    # ---- self-attention sub-block (pre-LN, causal, per-batch) ----
    xn = _layer_norm(x, ln1w_ref[0], ln1b_ref[0])
    qkv = jnp.dot(xn.astype(jnp.bfloat16), qkvw_ref[0],
                  preferred_element_type=jnp.float32) + qkvb_ref[0]   # (M, 3D)
    q = (qkv[:, 0 * D:1 * D] * (DH ** -0.5)).astype(jnp.bfloat16)
    k = qkv[:, 1 * D:2 * D].astype(jnp.bfloat16)
    v = qkv[:, 2 * D:3 * D].astype(jnp.bfloat16)
    # Per-batch view: scores are (B, S, S) -> no cross-batch FLOPs / masking.
    q = q.reshape(batch, seq, D)
    k = k.reshape(batch, seq, D)
    v = v.reshape(batch, seq, D)
    ctx_heads = []
    for h in range(H):                               # static unroll (H=2)
        sl = slice(h * DH, (h + 1) * DH)
        s = jnp.einsum('bqd,bkd->bqk', q[..., sl], k[..., sl],
                       preferred_element_type=jnp.float32) + causal
        s = s - jnp.max(s, axis=-1, keepdims=True)
        p = jnp.exp(s)
        p = p / jnp.sum(p, axis=-1, keepdims=True)   # exact softmax
        ctx_heads.append(
            jnp.einsum('bqk,bkd->bqd', p.astype(jnp.bfloat16), v[..., sl],
                       preferred_element_type=jnp.float32))
    ctx = jnp.concatenate(ctx_heads, axis=-1).reshape(batch * seq, D)
    attn = jnp.dot(ctx.astype(jnp.bfloat16), ow_ref[0],
                   preferred_element_type=jnp.float32) + ob_ref[0]
    x = x + attn                                     # residual

    # ---- MLP sub-block (quick_gelu) ----
    xn = _layer_norm(x, ln2w_ref[0], ln2b_ref[0])
    h1 = jnp.dot(xn.astype(jnp.bfloat16), f1w_ref[0],
                 preferred_element_type=jnp.float32) + f1b_ref[0]
    h1 = h1 * jax.nn.sigmoid(1.702 * h1)             # quick_gelu (f32 VPU/EUP)
    x = x + jnp.dot(h1.astype(jnp.bfloat16), f2w_ref[0],
                    preferred_element_type=jnp.float32) + f2b_ref[0]

    out_ref[...] = x                                 # stays resident next layer

    @pl.when(layer == n_layers - 1)
    def _():                                         # fused final layer norm
        out_ref[...] = _layer_norm(x, fw_ref[...], fb_ref[...])


def _const_spec(shape):
    """Same full block every layer (fetched once, no re-DMA across the axis)."""
    nd = len(shape)
    return pl.BlockSpec(tuple(shape), lambda l, _nd=nd: (0,) * _nd)


def _layer_spec(shape):
    """Stacked (L, ...) weight: stream one layer's slice per grid step."""
    nz = len(shape) - 1
    return pl.BlockSpec((1,) + tuple(shape[1:]),
                        lambda l, _nz=nz: (l,) + (0,) * _nz)


def run_clip_transformer(x_flat, params, *, batch, seq):
    """x_flat: (B*S, D) f32; params: stacked per-layer weights."""
    m_rows, dm = x_flat.shape
    weight_names = ["ln1w", "ln1b", "qkvw", "qkvb", "ow", "ob",
                    "ln2w", "ln2b", "f1w", "f1b", "f2w", "f2b"]
    layer_weights = [params[k] for k in weight_names]
    final_weights = [params["final_ln_w"], params["final_ln_b"]]

    in_specs = [_const_spec(x_flat.shape)]
    in_specs += [_layer_spec(w.shape) for w in layer_weights]
    in_specs += [_const_spec(w.shape) for w in final_weights]

    kernel = functools.partial(fused_clip_kernel, batch=batch, seq=seq)
    return pl.pallas_call(
        kernel,
        out_shape=jax.ShapeDtypeStruct((m_rows, dm), jnp.float32),
        grid_spec=pltpu.PrefetchScalarGridSpec(
            num_scalar_prefetch=0,
            grid=(LAYERS,),
            in_specs=in_specs,
            # Constant block index across the layer axis -> output stays
            # resident in VMEM and doubles as the layer-to-layer accumulator.
            out_specs=pl.BlockSpec((m_rows, dm), lambda l: (0, 0))),
        compiler_params=pltpu.CompilerParams(
            dimension_semantics=("arbitrary",),
            # Explicit budget (fits v7x's 64 MiB physical VMEM with headroom):
            # double-buffered per-layer weights + 2x (M, D) f32 activations
            # are well under 32 MiB at these (and real CLIP-L) shapes.
            vmem_limit_bytes=32 * 1024 * 1024),
    )(x_flat, *layer_weights, *final_weights)


def init_params(key):
    """Deterministic synthetic CLIP-text weights (matmul weights in bf16)."""
    keys = iter(jax.random.split(key, 12))
    bf = jnp.bfloat16

    def nrm(shape, dtype=jnp.float32, scale=0.02):
        return (scale * jax.random.normal(next(keys), shape)).astype(dtype)

    return {
        "tok_emb": nrm((VOCAB, D)),
        "pos_emb": nrm((MAX_LEN, D)),
        # stacked per-layer weights: leading axis = layer
        "ln1w": jnp.ones((LAYERS, 1, D), jnp.float32),
        "ln1b": jnp.zeros((LAYERS, 1, D), jnp.float32),
        # fused QKV: columns packed [ q(head0..H) | k(head0..H) | v(head0..H) ]
        "qkvw": nrm((LAYERS, D, 3 * D), bf),
        "qkvb": nrm((LAYERS, 1, 3 * D)),
        # out-proj: rows match concatenated head order (full-K matmul)
        "ow": nrm((LAYERS, D, D), bf),
        "ob": nrm((LAYERS, 1, D)),
        "ln2w": jnp.ones((LAYERS, 1, D), jnp.float32),
        "ln2b": jnp.zeros((LAYERS, 1, D), jnp.float32),
        "f1w": nrm((LAYERS, D, MLP), bf), "f1b": nrm((LAYERS, 1, MLP)),
        "f2w": nrm((LAYERS, MLP, D), bf), "f2b": nrm((LAYERS, 1, D)),
        "final_ln_w": jnp.ones((1, D), jnp.float32),
        "final_ln_b": jnp.zeros((1, D), jnp.float32),
    }


@jax.jit
def clip_text_embedder(input_ids, params):
    """Equivalent of CLIPTextModel(input_ids).last_hidden_state."""
    batch, seq = input_ids.shape
    # Embedding lookup (gather) + learned positional embedding: glue in JAX.
    # TODO(synk): the embedding gather could be fused via scalar-prefetch +
    # pl.Element row gather; left in XLA since it is a one-off tiny gather.
    # NOTE: at real CLIP scale (S=77) pad B*S up to a multiple of 8/128 rows
    # here (and drop the pad rows after) so every vreg/MXU tile is unmasked.
    x = params["tok_emb"][input_ids] + params["pos_emb"][None, :seq, :]
    x = x.reshape(batch * seq, D).astype(jnp.float32)
    out = run_clip_transformer(x, params, batch=batch, seq=seq)
    return out.reshape(batch, seq, D)


if __name__ == "__main__":
    # TODO(synk): the CLIPTokenizer (string -> token ids) has no Pallas
    # equivalent; deterministic synthetic token ids stand in for tokenization.
    key = jax.random.PRNGKey(0)
    key_ids, key_params = jax.random.split(key)
    batch = 2
    input_ids = jax.random.randint(key_ids, (batch, MAX_LEN), 0, VOCAB,
                                   dtype=jnp.int32)
    params = init_params(key_params)

    last_hidden_state = clip_text_embedder(input_ids, params)
    jax.block_until_ready(last_hidden_state)

    assert last_hidden_state.shape == (batch, MAX_LEN, D)
    assert last_hidden_state.dtype == jnp.float32
    assert bool(jnp.all(jnp.isfinite(last_hidden_state)))
    print("KERNEL_OK")
</pallas_src>

<mosaic_0001>
module attributes {stable_mosaic.version = 11 : i64} {
  func.func @fused_clip_kernel(%arg0: i32, %arg1: memref<16x128xf32, #tpu.memory_space<vmem>>, %arg2: memref<1x1x128xf32, #tpu.memory_space<vmem>>, %arg3: memref<1x1x128xf32, #tpu.memory_space<vmem>>, %arg4: memref<1x128x384xbf16, #tpu.memory_space<vmem>>, %arg5: memref<1x1x384xf32, #tpu.memory_space<vmem>>, %arg6: memref<1x128x128xbf16, #tpu.memory_space<vmem>>, %arg7: memref<1x1x128xf32, #tpu.memory_space<vmem>>, %arg8: memref<1x1x128xf32, #tpu.memory_space<vmem>>, %arg9: memref<1x1x128xf32, #tpu.memory_space<vmem>>, %arg10: memref<1x128x512xbf16, #tpu.memory_space<vmem>>, %arg11: memref<1x1x512xf32, #tpu.memory_space<vmem>>, %arg12: memref<1x512x128xbf16, #tpu.memory_space<vmem>>, %arg13: memref<1x1x128xf32, #tpu.memory_space<vmem>>, %arg14: memref<1x128xf32, #tpu.memory_space<vmem>>, %arg15: memref<1x128xf32, #tpu.memory_space<vmem>>, %arg16: memref<16x128xf32, #tpu.memory_space<vmem>>) attributes {dimension_semantics = [#tpu.dimension_semantics<arbitrary>], iteration_bounds = array<i64: 2>, scalar_prefetch = 0 : i64, scratch_operands = 0 : i64, tpu.core_type = #tpu.core_type<tc>, window_params = [{pipeline_mode = #tpu.pipeline_mode<synchronous>, transform_indices = @transform_0, window_bounds = array<i64: 16, 128>}, {transform_indices = @transform_1, window_bounds = array<i64: 1, 1, 128>}, {transform_indices = @transform_2, window_bounds = array<i64: 1, 1, 128>}, {transform_indices = @transform_3, window_bounds = array<i64: 1, 128, 384>}, {transform_indices = @transform_4, window_bounds = array<i64: 1, 1, 384>}, {transform_indices = @transform_5, window_bounds = array<i64: 1, 128, 128>}, {transform_indices = @transform_6, window_bounds = array<i64: 1, 1, 128>}, {transform_indices = @transform_7, window_bounds = array<i64: 1, 1, 128>}, {transform_indices = @transform_8, window_bounds = array<i64: 1, 1, 128>}, {transform_indices = @transform_9, window_bounds = array<i64: 1, 128, 512>}, {transform_indices = @transform_10, window_bounds = array<i64: 1, 1, 512>}, {transform_indices = @transform_11, window_bounds = array<i64: 1, 512, 128>}, {transform_indices = @transform_12, window_bounds = array<i64: 1, 1, 128>}, {pipeline_mode = #tpu.pipeline_mode<synchronous>, transform_indices = @transform_13, window_bounds = array<i64: 1, 128>}, {pipeline_mode = #tpu.pipeline_mode<synchronous>, transform_indices = @transform_14, window_bounds = array<i64: 1, 128>}, {pipeline_mode = #tpu.pipeline_mode<synchronous>, transform_indices = @transform_15, window_bounds = array<i64: 16, 128>}]} {
    %c0_i32 = arith.constant 0 : i32
    %0 = arith.cmpi eq, %arg0, %c0_i32 : i32
    %1 = arith.extui %0 : i1 to i32
    %c0_i32_0 = arith.constant 0 : i32
    %2 = arith.cmpi ne, %1, %c0_i32_0 : i32
    scf.if %2 {
      %c0_67 = arith.constant 0 : index
      %c0_68 = arith.constant 0 : index
      %157 = vector.load %arg1[%c0_67, %c0_68] : memref<16x128xf32, #tpu.memory_space<vmem>>, vector<16x128xf32>
      %c0_69 = arith.constant 0 : index
      %c0_70 = arith.constant 0 : index
      %158 = vector.load %arg16[%c0_69, %c0_70] : memref<16x128xf32, #tpu.memory_space<vmem>>, vector<16x128xf32>
      tpu.vector_store %arg16[%c0_69, %c0_70], %157 {strides = array<i32>} : memref<16x128xf32, #tpu.memory_space<vmem>>, vector<16x128xf32>,
    } else {
    }
    %c0 = arith.constant 0 : index
    %c0_1 = arith.constant 0 : index
    %3 = vector.load %arg16[%c0, %c0_1] : memref<16x128xf32, #tpu.memory_space<vmem>>, vector<16x128xf32>
    %4 = tpu.iota {dimensions = array<i32: 0>} : vector<8x8xi32>
    %5 = tpu.iota {dimensions = array<i32: 1>} : vector<8x8xi32>
    %6 = arith.cmpi sle, %5, %4 : vector<8x8xi32>
    %cst = arith.constant 0.000000e+00 : f32
    %cst_2 = arith.constant -1.000000e+30 : f32
    %7 = vector.broadcast %cst : f32 to vector<8x8xf32>
    %8 = vector.broadcast %cst_2 : f32 to vector<8x8xf32>
    %9 = arith.select %6, %7, %8 : vector<8x8xi1>, vector<8x8xf32>
    %c0_3 = arith.constant 0 : index
    %c0_4 = arith.constant 0 : index
    %c0_5 = arith.constant 0 : index
    %10 = vector.load %arg2[%c0_3, %c0_4, %c0_5] : memref<1x1x128xf32, #tpu.memory_space<vmem>>, vector<1x1x128xf32>
    %11 = vector.shape_cast %10 : vector<1x1x128xf32> to vector<1x128xf32>
    %c0_6 = arith.constant 0 : index
    %c0_7 = arith.constant 0 : index
    %c0_8 = arith.constant 0 : index
    %12 = vector.load %arg3[%c0_6, %c0_7, %c0_8] : memref<1x1x128xf32, #tpu.memory_space<vmem>>, vector<1x1x128xf32>
    %13 = vector.shape_cast %12 : vector<1x1x128xf32> to vector<1x128xf32>
    %cst_9 = arith.constant dense<0.000000e+00> : vector<16xf32>
    %14 = vector.multi_reduction <add>, %3, %cst_9 [1] : vector<16x128xf32> to vector<16xf32>
    %15 = vector.shape_cast %14 : vector<16xf32> to vector<16x1xf32>
    %cst_10 = arith.constant 1.280000e+02 : f32
    %16 = vector.broadcast %cst_10 : f32 to vector<16x1xf32>
    %17 = arith.divf %15, %16 : vector<16x1xf32>
    %18 = vector.broadcast %17 : vector<16x1xf32> to vector<16x128xf32>
    %19 = arith.subf %3, %18 : vector<16x128xf32>
    %20 = arith.mulf %19, %19 : vector<16x128xf32>
    %cst_11 = arith.constant dense<0.000000e+00> : vector<16xf32>
    %21 = vector.multi_reduction <add>, %20, %cst_11 [1] : vector<16x128xf32> to vector<16xf32>
    %22 = vector.shape_cast %21 : vector<16xf32> to vector<16x1xf32>
    %cst_12 = arith.constant 1.280000e+02 : f32
    %23 = vector.broadcast %cst_12 : f32 to vector<16x1xf32>
    %24 = arith.divf %22, %23 : vector<16x1xf32>
    %25 = vector.broadcast %17 : vector<16x1xf32> to vector<16x128xf32>
    %26 = arith.subf %3, %25 : vector<16x128xf32>
    %cst_13 = arith.constant 9.99999974E-6 : f32
    %27 = vector.broadcast %cst_13 : f32 to vector<16x1xf32>
    %28 = arith.addf %24, %27 : vector<16x1xf32>
    %29 = math.rsqrt %28 : vector<16x1xf32>
    %30 = vector.broadcast %29 : vector<16x1xf32> to vector<16x128xf32>
    %31 = arith.mulf %26, %30 : vector<16x128xf32>
    %32 = vector.broadcast %11 : vector<1x128xf32> to vector<16x128xf32>
    %33 = arith.mulf %31, %32 : vector<16x128xf32>
    %34 = vector.broadcast %13 : vector<1x128xf32> to vector<16x128xf32>
    %35 = arith.addf %33, %34 : vector<16x128xf32>
    %36 = arith.truncf %35 : vector<16x128xf32> to vector<16x128xbf16>
    %c0_14 = arith.constant 0 : index
    %c0_15 = arith.constant 0 : index
    %c0_16 = arith.constant 0 : index
    %37 = vector.load %arg4[%c0_14, %c0_15, %c0_16] : memref<1x128x384xbf16, #tpu.memory_space<vmem>>, vector<1x128x384xbf16>
    %38 = vector.shape_cast %37 : vector<1x128x384xbf16> to vector<128x384xbf16>
    %cst_17 = arith.constant dense<0.000000e+00> : vector<16x384xf32>
    %39 = tpu.matmul %36, %38, %cst_17 {dimension_numbers = #tpu.dot_dimension_numbers<[1], [0], [0], [1], [0, 0, 1, 1], [], []>} : vector<16x128xbf16>, vector<128x384xbf16>, vector<16x384xf32> -> vector<16x384xf32>
    %c0_18 = arith.constant 0 : index
    %c0_19 = arith.constant 0 : index
    %c0_20 = arith.constant 0 : index
    %40 = vector.load %arg5[%c0_18, %c0_19, %c0_20] : memref<1x1x384xf32, #tpu.memory_space<vmem>>, vector<1x1x384xf32>
    %41 = vector.shape_cast %40 : vector<1x1x384xf32> to vector<1x384xf32>
    %42 = vector.broadcast %41 : vector<1x384xf32> to vector<16x384xf32>
    %43 = arith.addf %39, %42 : vector<16x384xf32>
    %44 = vector.extract_strided_slice %43 {offsets = [0, 0], sizes = [16, 128], strides = [1, 1]} : vector<16x384xf32> to vector<16x128xf32>
    %cst_21 = arith.constant 1.250000e-01 : f32
    %45 = vector.broadcast %cst_21 : f32 to vector<16x128xf32>
    %46 = arith.mulf %44, %45 : vector<16x128xf32>
    %47 = arith.truncf %46 : vector<16x128xf32> to vector<16x128xbf16>
    %48 = vector.extract_strided_slice %43 {offsets = [0, 128], sizes = [16, 128], strides = [1, 1]} : vector<16x384xf32> to vector<16x128xf32>
    %49 = arith.truncf %48 : vector<16x128xf32> to vector<16x128xbf16>
    %50 = vector.extract_strided_slice %43 {offsets = [0, 256], sizes = [16, 128], strides = [1, 1]} : vector<16x384xf32> to vector<16x128xf32>
    %51 = arith.truncf %50 : vector<16x128xf32> to vector<16x128xbf16>
    %52 = vector.shape_cast %47 : vector<16x128xbf16> to vector<2x8x128xbf16>
    %53 = vector.shape_cast %49 : vector<16x128xbf16> to vector<2x8x128xbf16>
    %54 = vector.shape_cast %51 : vector<16x128xbf16> to vector<2x8x128xbf16>
    %55 = vector.extract_strided_slice %52 {offsets = [0, 0, 0], sizes = [2, 8, 64], strides = [1, 1, 1]} : vector<2x8x128xbf16> to vector<2x8x64xbf16>
    %56 = vector.extract_strided_slice %53 {offsets = [0, 0, 0], sizes = [2, 8, 64], strides = [1, 1, 1]} : vector<2x8x128xbf16> to vector<2x8x64xbf16>
    "tpu.trace_start"() <{level = 10 : i32, message = "bqd,bkd->bqk"}> : () -> ()
    %cst_22 = arith.constant dense<0.000000e+00> : vector<2x8x8xf32>
    %57 = tpu.matmul %55, %56, %cst_22 {dimension_numbers = #tpu.dot_dimension_numbers<[2], [2], [1], [1], [0, 0, 0, 1, 1, 1], [0], [0]>} : vector<2x8x64xbf16>, vector<2x8x64xbf16>, vector<2x8x8xf32> -> vector<2x8x8xf32>
    "tpu.trace_stop"() : () -> ()
    %58 = vector.shape_cast %9 : vector<8x8xf32> to vector<1x8x8xf32>
    %59 = vector.broadcast %58 : vector<1x8x8xf32> to vector<2x8x8xf32>
    %60 = arith.addf %57, %59 : vector<2x8x8xf32>
    %cst_23 = arith.constant dense<0xFF800000> : vector<2x8xf32>
    %61 = vector.multi_reduction <maximumf>, %60, %cst_23 [2] : vector<2x8x8xf32> to vector<2x8xf32>
    %62 = vector.shape_cast %61 : vector<2x8xf32> to vector<2x8x1xf32>
    %63 = vector.broadcast %62 : vector<2x8x1xf32> to vector<2x8x8xf32>
    %64 = arith.subf %60, %63 : vector<2x8x8xf32>
    %65 = math.exp %64 : vector<2x8x8xf32>
    %cst_24 = arith.constant dense<0.000000e+00> : vector<2x8xf32>
    %66 = vector.multi_reduction <add>, %65, %cst_24 [2] : vector<2x8x8xf32> to vector<2x8xf32>
    %67 = vector.shape_cast %66 : vector<2x8xf32> to vector<2x8x1xf32>
    %68 = vector.broadcast %67 : vector<2x8x1xf32> to vector<2x8x8xf32>
    %69 = arith.divf %65, %68 : vector<2x8x8xf32>
    %70 = arith.truncf %69 : vector<2x8x8xf32> to vector<2x8x8xbf16>
    %71 = vector.extract_strided_slice %54 {offsets = [0, 0, 0], sizes = [2, 8, 64], strides = [1, 1, 1]} : vector<2x8x128xbf16> to vector<2x8x64xbf16>
    "tpu.trace_start"() <{level = 10 : i32, message = "bqk,bkd->bqd"}> : () -> ()
    %cst_25 = arith.constant dense<0.000000e+00> : vector<2x8x64xf32>
    %72 = tpu.matmul %70, %71, %cst_25 {dimension_numbers = #tpu.dot_dimension_numbers<[2], [1], [1], [2], [0, 0, 0, 1, 1, 2], [0], [0]>} : vector<2x8x8xbf16>, vector<2x8x64xbf16>, vector<2x8x64xf32> -> vector<2x8x64xf32>
    "tpu.trace_stop"() : () -> ()
    %73 = vector.extract_strided_slice %52 {offsets = [0, 0, 64], sizes = [2, 8, 64], strides = [1, 1, 1]} : vector<2x8x128xbf16> to vector<2x8x64xbf16>
    %74 = vector.extract_strided_slice %53 {offsets = [0, 0, 64], sizes = [2, 8, 64], strides = [1, 1, 1]} : vector<2x8x128xbf16> to vector<2x8x64xbf16>
    "tpu.trace_start"() <{level = 10 : i32, message = "bqd,bkd->bqk"}> : () -> ()
    %cst_26 = arith.constant dense<0.000000e+00> : vector<2x8x8xf32>
    %75 = tpu.matmul %73, %74, %cst_26 {dimension_numbers = #tpu.dot_dimension_numbers<[2], [2], [1], [1], [0, 0, 0, 1, 1, 1], [0], [0]>} : vector<2x8x64xbf16>, vector<2x8x64xbf16>, vector<2x8x8xf32> -> vector<2x8x8xf32>
    "tpu.trace_stop"() : () -> ()
    %76 = vector.shape_cast %9 : vector<8x8xf32> to vector<1x8x8xf32>
    %77 = vector.broadcast %76 : vector<1x8x8xf32> to vector<2x8x8xf32>
    %78 = arith.addf %75, %77 : vector<2x8x8xf32>
    %cst_27 = arith.constant dense<0xFF800000> : vector<2x8xf32>
    %79 = vector.multi_reduction <maximumf>, %78, %cst_27 [2] : vector<2x8x8xf32> to vector<2x8xf32>
    %80 = vector.shape_cast %79 : vector<2x8xf32> to vector<2x8x1xf32>
    %81 = vector.broadcast %80 : vector<2x8x1xf32> to vector<2x8x8xf32>
    %82 = arith.subf %78, %81 : vector<2x8x8xf32>
    %83 = math.exp %82 : vector<2x8x8xf32>
    %cst_28 = arith.constant dense<0.000000e+00> : vector<2x8xf32>
    %84 = vector.multi_reduction <add>, %83, %cst_28 [2] : vector<2x8x8xf32> to vector<2x8xf32>
    %85 = vector.shape_cast %84 : vector<2x8xf32> to vector<2x8x1xf32>
    %86 = vector.broadcast %85 : vector<2x8x1xf32> to vector<2x8x8xf32>
    %87 = arith.divf %83, %86 : vector<2x8x8xf32>
    %88 = arith.truncf %87 : vector<2x8x8xf32> to vector<2x8x8xbf16>
    %89 = vector.extract_strided_slice %54 {offsets = [0, 0, 64], sizes = [2, 8, 64], strides = [1, 1, 1]} : vector<2x8x128xbf16> to vector<2x8x64xbf16>
    "tpu.trace_start"() <{level = 10 : i32, message = "bqk,bkd->bqd"}> : () -> ()
    %cst_29 = arith.constant dense<0.000000e+00> : vector<2x8x64xf32>
    %90 = tpu.matmul %88, %89, %cst_29 {dimension_numbers = #tpu.dot_dimension_numbers<[2], [1], [1], [2], [0, 0, 0, 1, 1, 2], [0], [0]>} : vector<2x8x8xbf16>, vector<2x8x64xbf16>, vector<2x8x64xf32> -> vector<2x8x64xf32>
    "tpu.trace_stop"() : () -> ()
    %91 = tpu.concatenate %72, %90 in 2 : vector<2x8x64xf32>, vector<2x8x64xf32> -> vector<2x8x128xf32>
    %92 = vector.shape_cast %91 : vector<2x8x128xf32> to vector<16x128xf32>
    %93 = arith.truncf %92 : vector<16x128xf32> to vector<16x128xbf16>
    %c0_30 = arith.constant 0 : index
    %c0_31 = arith.constant 0 : index
    %c0_32 = arith.constant 0 : index
    %94 = vector.load %arg6[%c0_30, %c0_31, %c0_32] : memref<1x128x128xbf16, #tpu.memory_space<vmem>>, vector<1x128x128xbf16>
    %95 = vector.shape_cast %94 : vector<1x128x128xbf16> to vector<128x128xbf16>
    %cst_33 = arith.constant dense<0.000000e+00> : vector<16x128xf32>
    %96 = tpu.matmul %93, %95, %cst_33 {dimension_numbers = #tpu.dot_dimension_numbers<[1], [0], [0], [1], [0, 0, 1, 1], [], []>} : vector<16x128xbf16>, vector<128x128xbf16>, vector<16x128xf32> -> vector<16x128xf32>
    %c0_34 = arith.constant 0 : index
    %c0_35 = arith.constant 0 : index
    %c0_36 = arith.constant 0 : index
    %97 = vector.load %arg7[%c0_34, %c0_35, %c0_36] : memref<1x1x128xf32, #tpu.memory_space<vmem>>, vector<1x1x128xf32>
    %98 = vector.shape_cast %97 : vector<1x1x128xf32> to vector<1x128xf32>
    %99 = vector.broadcast %98 : vector<1x128xf32> to vector<16x128xf32>
    %100 = arith.addf %96, %99 : vector<16x128xf32>
    %101 = arith.addf %3, %100 : vector<16x128xf32>
    %c0_37 = arith.constant 0 : index
    %c0_38 = arith.constant 0 : index
    %c0_39 = arith.constant 0 : index
    %102 = vector.load %arg8[%c0_37, %c0_38, %c0_39] : memref<1x1x128xf32, #tpu.memory_space<vmem>>, vector<1x1x128xf32>
    %103 = vector.shape_cast %102 : vector<1x1x128xf32> to vector<1x128xf32>
    %c0_40 = arith.constant 0 : index
    %c0_41 = arith.constant 0 : index
    %c0_42 = arith.constant 0 : index
    %104 = vector.load %arg9[%c0_40, %c0_41, %c0_42] : memref<1x1x128xf32, #tpu.memory_space<vmem>>, vector<1x1x128xf32>
    %105 = vector.shape_cast %104 : vector<1x1x128xf32> to vector<1x128xf32>
    %cst_43 = arith.constant dense<0.000000e+00> : vector<16xf32>
    %106 = vector.multi_reduction <add>, %101, %cst_43 [1] : vector<16x128xf32> to vector<16xf32>
    %107 = vector.shape_cast %106 : vector<16xf32> to vector<16x1xf32>
    %cst_44 = arith.constant 1.280000e+02 : f32
    %108 = vector.broadcast %cst_44 : f32 to vector<16x1xf32>
    %109 = arith.divf %107, %108 : vector<16x1xf32>
    %110 = vector.broadcast %109 : vector<16x1xf32> to vector<16x128xf32>
    %111 = arith.subf %101, %110 : vector<16x128xf32>
    %112 = arith.mulf %111, %111 : vector<16x128xf32>
    %cst_45 = arith.constant dense<0.000000e+00> : vector<16xf32>
    %113 = vector.multi_reduction <add>, %112, %cst_45 [1] : vector<16x128xf32> to vector<16xf32>
    %114 = vector.shape_cast %113 : vector<16xf32> to vector<16x1xf32>
    %cst_46 = arith.constant 1.280000e+02 : f32
    %115 = vector.broadcast %cst_46 : f32 to vector<16x1xf32>
    %116 = arith.divf %114, %115 : vector<16x1xf32>
    %117 = vector.broadcast %109 : vector<16x1xf32> to vector<16x128xf32>
    %118 = arith.subf %101, %117 : vector<16x128xf32>
    %cst_47 = arith.constant 9.99999974E-6 : f32
    %119 = vector.broadcast %cst_47 : f32 to vector<16x1xf32>
    %120 = arith.addf %116, %119 : vector<16x1xf32>
    %121 = math.rsqrt %120 : vector<16x1xf32>
    %122 = vector.broadcast %121 : vector<16x1xf32> to vector<16x128xf32>
    %123 = arith.mulf %118, %122 : vector<16x128xf32>
    %124 = vector.broadcast %103 : vector<1x128xf32> to vector<16x128xf32>
    %125 = arith.mulf %123, %124 : vector<16x128xf32>
    %126 = vector.broadcast %105 : vector<1x128xf32> to vector<16x128xf32>
    %127 = arith.addf %125, %126 : vector<16x128xf32>
    %128 = arith.truncf %127 : vector<16x128xf32> to vector<16x128xbf16>
    %c0_48 = arith.constant 0 : index
    %c0_49 = arith.constant 0 : index
    %c0_50 = arith.constant 0 : index
    %129 = vector.load %arg10[%c0_48, %c0_49, %c0_50] : memref<1x128x512xbf16, #tpu.memory_space<vmem>>, vector<1x128x512xbf16>
    %130 = vector.shape_cast %129 : vector<1x128x512xbf16> to vector<128x512xbf16>
    %cst_51 = arith.constant dense<0.000000e+00> : vector<16x512xf32>
    %131 = tpu.matmul %128, %130, %cst_51 {dimension_numbers = #tpu.dot_dimension_numbers<[1], [0], [0], [1], [0, 0, 1, 1], [], []>} : vector<16x128xbf16>, vector<128x512xbf16>, vector<16x512xf32> -> vector<16x512xf32>
    %c0_52 = arith.constant 0 : index
    %c0_53 = arith.constant 0 : index
    %c0_54 = arith.constant 0 : index
    %132 = vector.load %arg11[%c0_52, %c0_53, %c0_54] : memref<1x1x512xf32, #tpu.memory_space<vmem>>, vector<1x1x512xf32>
    %133 = vector.shape_cast %132 : vector<1x1x512xf32> to vector<1x512xf32>
    %134 = vector.broadcast %133 : vector<1x512xf32> to vector<16x512xf32>
    %135 = arith.addf %131, %134 : vector<16x512xf32>
    %cst_55 = arith.constant 1.702000e+00 : f32
    %136 = vector.broadcast %cst_55 : f32 to vector<16x512xf32>
    %137 = arith.mulf %136, %135 : vector<16x512xf32>
    %138 = arith.negf %137 : vector<16x512xf32>
    %139 = math.exp %138 : vector<16x512xf32>
    %cst_56 = arith.constant 1.000000e+00 : f32
    %140 = vector.broadcast %cst_56 : f32 to vector<16x512xf32>
    %141 = arith.addf %140, %139 : vector<16x512xf32>
    %142 = arith.divf %140, %141 : vector<16x512xf32>
    %143 = arith.mulf %135, %142 : vector<16x512xf32>
    %144 = arith.truncf %143 : vector<16x512xf32> to vector<16x512xbf16>
    %c0_57 = arith.constant 0 : index
    %c0_58 = arith.constant 0 : index
    %c0_59 = arith.constant 0 : index
    %145 = vector.load %arg12[%c0_57, %c0_58, %c0_59] : memref<1x512x128xbf16, #tpu.memory_space<vmem>>, vector<1x512x128xbf16>
    %146 = vector.shape_cast %145 : vector<1x512x128xbf16> to vector<512x128xbf16>
    %cst_60 = arith.constant dense<0.000000e+00> : vector<16x128xf32>
    %147 = tpu.matmul %144, %146, %cst_60 {dimension_numbers = #tpu.dot_dimension_numbers<[1], [0], [0], [1], [0, 0, 1, 1], [], []>} : vector<16x512xbf16>, vector<512x128xbf16>, vector<16x128xf32> -> vector<16x128xf32>
    %148 = arith.addf %101, %147 : vector<16x128xf32>
    %c0_61 = arith.constant 0 : index
    %c0_62 = arith.constant 0 : index
    %c0_63 = arith.constant 0 : index
    %149 = vector.load %arg13[%c0_61, %c0_62, %c0_63] : memref<1x1x128xf32, #tpu.memory_space<vmem>>, vector<1x1x128xf32>
    %150 = vector.shape_cast %149 : vector<1x1x128xf32> to vector<1x128xf32>
    %151 = vector.broadcast %150 : vector<1x128xf32> to vector<16x128xf32>
    %152 = arith.addf %148, %151 : vector<16x128xf32>
    %c0_64 = arith.constant 0 : index
    %c0_65 = arith.constant 0 : index
    %153 = vector.load %arg16[%c0_64, %c0_65] : memref<16x128xf32, #tpu.memory_space<vmem>>, vector<16x128xf32>
    tpu.vector_store %arg16[%c0_64, %c0_65], %152 {strides = array<i32>} : memref<16x128xf32, #tpu.memory_space<vmem>>, vector<16x128xf32>,
    %c1_i32 = arith.constant 1 : i32
    %154 = arith.cmpi eq, %arg0, %c1_i32 : i32
    %155 = arith.extui %154 : i1 to i32
    %c0_i32_66 = arith.constant 0 : i32
    %156 = arith.cmpi ne, %155, %c0_i32_66 : i32
    scf.if %156 {
      %c0_67 = arith.constant 0 : index
      %c0_68 = arith.constant 0 : index
      %157 = vector.load %arg14[%c0_67, %c0_68] : memref<1x128xf32, #tpu.memory_space<vmem>>, vector<1x128xf32>
      %c0_69 = arith.constant 0 : index
      %c0_70 = arith.constant 0 : index
      %158 = vector.load %arg15[%c0_69, %c0_70] : memref<1x128xf32, #tpu.memory_space<vmem>>, vector<1x128xf32>
      %cst_71 = arith.constant dense<0.000000e+00> : vector<16xf32>
      %159 = vector.multi_reduction <add>, %152, %cst_71 [1] : vector<16x128xf32> to vector<16xf32>
      %160 = vector.shape_cast %159 : vector<16xf32> to vector<16x1xf32>
      %cst_72 = arith.constant 1.280000e+02 : f32
      %161 = vector.broadcast %cst_72 : f32 to vector<16x1xf32>
      %162 = arith.divf %160, %161 : vector<16x1xf32>
      %163 = vector.broadcast %162 : vector<16x1xf32> to vector<16x128xf32>
      %164 = arith.subf %152, %163 : vector<16x128xf32>
      %165 = arith.mulf %164, %164 : vector<16x128xf32>
      %cst_73 = arith.constant dense<0.000000e+00> : vector<16xf32>
      %166 = vector.multi_reduction <add>, %165, %cst_73 [1] : vector<16x128xf32> to vector<16xf32>
      %167 = vector.shape_cast %166 : vector<16xf32> to vector<16x1xf32>
      %cst_74 = arith.constant 1.280000e+02 : f32
      %168 = vector.broadcast %cst_74 : f32 to vector<16x1xf32>
      %169 = arith.divf %167, %168 : vector<16x1xf32>
      %170 = vector.broadcast %162 : vector<16x1xf32> to vector<16x128xf32>
      %171 = arith.subf %152, %170 : vector<16x128xf32>
      %cst_75 = arith.constant 9.99999974E-6 : f32
      %172 = vector.broadcast %cst_75 : f32 to vector<16x1xf32>
      %173 = arith.addf %169, %172 : vector<16x1xf32>
      %174 = math.rsqrt %173 : vector<16x1xf32>
      %175 = vector.broadcast %174 : vector<16x1xf32> to vector<16x128xf32>
      %176 = arith.mulf %171, %175 : vector<16x128xf32>
      %177 = vector.broadcast %157 : vector<1x128xf32> to vector<16x128xf32>
      %178 = arith.mulf %176, %177 : vector<16x128xf32>
      %179 = vector.broadcast %158 : vector<1x128xf32> to vector<16x128xf32>
      %180 = arith.addf %178, %179 : vector<16x128xf32>
      %c0_76 = arith.constant 0 : index
      %c0_77 = arith.constant 0 : index
      %181 = vector.load %arg16[%c0_76, %c0_77] : memref<16x128xf32, #tpu.memory_space<vmem>>, vector<16x128xf32>
      tpu.vector_store %arg16[%c0_76, %c0_77], %180 {strides = array<i32>} : memref<16x128xf32, #tpu.memory_space<vmem>>, vector<16x128xf32>,
    } else {
    }
    return
  }
  func.func @transform_0(%arg0: i32) -> (i32, i32) {
    %c0_i32 = arith.constant 0 : i32
    %c0_i32_0 = arith.constant 0 : i32
    %c0_i32_1 = arith.constant 0 : i32
    return %c0_i32, %c0_i32_0 : i32, i32
  }
  func.func @transform_1(%arg0: i32) -> (i32, i32, i32) {
    %c0_i32 = arith.constant 0 : i32
    %c0_i32_0 = arith.constant 0 : i32
    %c0_i32_1 = arith.constant 0 : i32
    return %arg0, %c0_i32, %c0_i32_0 : i32, i32, i32
  }
  func.func @transform_2(%arg0: i32) -> (i32, i32, i32) {
    %c0_i32 = arith.constant 0 : i32
    %c0_i32_0 = arith.constant 0 : i32
    %c0_i32_1 = arith.constant 0 : i32
    return %arg0, %c0_i32, %c0_i32_0 : i32, i32, i32
  }
  func.func @transform_3(%arg0: i32) -> (i32, i32, i32) {
    %c0_i32 = arith.constant 0 : i32
    %c0_i32_0 = arith.constant 0 : i32
    %c0_i32_1 = arith.constant 0 : i32
    return %arg0, %c0_i32, %c0_i32_0 : i32, i32, i32
  }
  func.func @transform_4(%arg0: i32) -> (i32, i32, i32) {
    %c0_i32 = arith.constant 0 : i32
    %c0_i32_0 = arith.constant 0 : i32
    %c0_i32_1 = arith.constant 0 : i32
    return %arg0, %c0_i32, %c0_i32_0 : i32, i32, i32
  }
  func.func @transform_5(%arg0: i32) -> (i32, i32, i32) {
    %c0_i32 = arith.constant 0 : i32
    %c0_i32_0 = arith.constant 0 : i32
    %c0_i32_1 = arith.constant 0 : i32
    return %arg0, %c0_i32, %c0_i32_0 : i32, i32, i32
  }
  func.func @transform_6(%arg0: i32) -> (i32, i32, i32) {
    %c0_i32 = arith.constant 0 : i32
    %c0_i32_0 = arith.constant 0 : i32
    %c0_i32_1 = arith.constant 0 : i32
    return %arg0, %c0_i32, %c0_i32_0 : i32, i32, i32
  }
  func.func @transform_7(%arg0: i32) -> (i32, i32, i32) {
    %c0_i32 = arith.constant 0 : i32
    %c0_i32_0 = arith.constant 0 : i32
    %c0_i32_1 = arith.constant 0 : i32
    return %arg0, %c0_i32, %c0_i32_0 : i32, i32, i32
  }
  func.func @transform_8(%arg0: i32) -> (i32, i32, i32) {
    %c0_i32 = arith.constant 0 : i32
    %c0_i32_0 = arith.constant 0 : i32
    %c0_i32_1 = arith.constant 0 : i32
    return %arg0, %c0_i32, %c0_i32_0 : i32, i32, i32
  }
  func.func @transform_9(%arg0: i32) -> (i32, i32, i32) {
    %c0_i32 = arith.constant 0 : i32
    %c0_i32_0 = arith.constant 0 : i32
    %c0_i32_1 = arith.constant 0 : i32
    return %arg0, %c0_i32, %c0_i32_0 : i32, i32, i32
  }
  func.func @transform_10(%arg0: i32) -> (i32, i32, i32) {
    %c0_i32 = arith.constant 0 : i32
    %c0_i32_0 = arith.constant 0 : i32
    %c0_i32_1 = arith.constant 0 : i32
    return %arg0, %c0_i32, %c0_i32_0 : i32, i32, i32
  }
  func.func @transform_11(%arg0: i32) -> (i32, i32, i32) {
    %c0_i32 = arith.constant 0 : i32
    %c0_i32_0 = arith.constant 0 : i32
    %c0_i32_1 = arith.constant 0 : i32
    return %arg0, %c0_i32, %c0_i32_0 : i32, i32, i32
  }
  func.func @transform_12(%arg0: i32) -> (i32, i32, i32) {
    %c0_i32 = arith.constant 0 : i32
    %c0_i32_0 = arith.constant 0 : i32
    %c0_i32_1 = arith.constant 0 : i32
    return %arg0, %c0_i32, %c0_i32_0 : i32, i32, i32
  }
  func.func @transform_13(%arg0: i32) -> (i32, i32) {
    %c0_i32 = arith.constant 0 : i32
    %c0_i32_0 = arith.constant 0 : i32
    %c0_i32_1 = arith.constant 0 : i32
    return %c0_i32, %c0_i32_0 : i32, i32
  }
  func.func @transform_14(%arg0: i32) -> (i32, i32) {
    %c0_i32 = arith.constant 0 : i32
    %c0_i32_0 = arith.constant 0 : i32
    %c0_i32_1 = arith.constant 0 : i32
    return %c0_i32, %c0_i32_0 : i32, i32
  }
  func.func @transform_15(%arg0: i32) -> (i32, i32) {
    %c0_i32 = arith.constant 0 : i32
    %c0_i32_0 = arith.constant 0 : i32
    %c0_i32_1 = arith.constant 0 : i32
    return %c0_i32, %c0_i32_0 : i32, i32
  }
}

</mosaic_0001>

<bundles_post_ra>
// kernel: clip_text_embedder.1
= control target key start
LH: loop header
LB: loop body
LE: loop exit
PB: predicated region body
PF: predicated region fallthrough
CT: control target
= control target key end

     0   :  { %s4047_s0 = inlined_call_operand.vmem [shape: f32[16,128], index: 0, kind: input, shape index: {}]   ;;  %s4048_s1 = inlined_call_operand.vmem [shape: f32[2,1,128], index: 1, kind: input, shape index: {}]   ;;  %s4049_s2 = inlined_call_operand.vmem [shape: f32[2,1,128], index: 2, kind: input, shape index: {}]   ;;  %s4050_s3 = inlined_call_operand.hbm [shape: bf16[2,128,384], index: 3, kind: input, shape index: {}]   ;;  %s4051_s4 = inlined_call_operand.vmem [shape: f32[2,1,384], index: 4, kind: input, shape index: {}]   ;;  %s4052_s5 = inlined_call_operand.vmem [shape: bf16[2,128,128], index: 5, kind: input, shape index: {}]   ;;  %s4053_s6 = inlined_call_operand.vmem [shape: f32[2,1,128], index: 6, kind: input, shape index: {}]   ;;  %s4054_s7 = inlined_call_operand.vmem [shape: f32[2,1,128], index: 7, kind: input, shape index: {}]   ;;  %s4055_s8 = inlined_call_operand.vmem [shape: f32[2,1,128], index: 8, kind: input, shape index: {}]   ;;  %s4056_s9 = inlined_call_operand.hbm [shape: bf16[2,128,512], index: 9, kind: input, shape index: {}]   ;;  %s4057_s10 = inlined_call_operand.vmem [shape: f32[2,1,512], index: 10, kind: input, shape index: {}]   ;;  %s4058_s11 = inlined_call_operand.hbm [shape: bf16[2,512,128], index: 11, kind: input, shape index: {}]   ;;  %s4059_s12 = inlined_call_operand.vmem [shape: f32[2,1,128], index: 12, kind: input, shape index: {}]   ;;  %s4060_s13 = inlined_call_operand.vmem [shape: f32[1,128], index: 13, kind: input, shape index: {}]   ;;  %s4061_s14 = inlined_call_operand.vmem [shape: f32[1,128], index: 14, kind: input, shape index: {}]   ;;  %s4062_s15 = inlined_call_operand.hbm [shape: f32[16,128], index: 15, kind: output, shape index: {}]  }
   0x1   :  { %4068 = sst [smem:[#allocation15_spill]] %s4047_s0 }
   0x2   :  { %4069 = sst [smem:[#allocation16_spill]] %s4050_s3 }
   0x3   :  { %4070 = sst [smem:[#allocation17_spill]] %s4052_s5 }
   0x4   :  { %4071 = sst [smem:[#allocation18_spill]] %s4055_s8 }
   0x5   :  { %4072 = sst [smem:[#allocation19_spill]] %s4056_s9 }
   0x6   :  { %4073 = sst [smem:[#allocation20_spill]] %s4057_s10 }
   0x7   :  { %4074 = sst [smem:[#allocation21_spill]] %s4058_s11 }
   0x8   :  { %4075 = sst [smem:[#allocation22_spill]] %s4059_s12 }
   0x9   :  { %4076 = sst [smem:[#allocation23_spill]] %s4060_s13 }
   0xa   :  { %4077 = sst [smem:[#allocation24_spill]] %s4061_s14 }
   0xb   :  { %4078 = sst [smem:[#allocation25_spill]] %s4062_s15 }
   0xc   :  { %20 = vsyncpa [#allocation3], 0 }
   0xd   :  { %22 = vsyncpa [#allocation3 + $0x1], 0 }
   0xe   :  { %23 = vsyncpa [#allocation6], 0 }
   0xf   :  { %25 = vsyncpa [#allocation6 + $0x1], 0 }
  0x10   :  { %26 = vsyncpa [#allocation4], 0  ;;  %s3375_s18 = smov 0   ;;  %s3377_s19 = smov 0  }
  0x11   :  { %s3379_s20 = smov 0   ;;  %s3381_s21 = smov 0  }
  0x12 LB: > { %4079 = sst [smem:[#allocation12_spill]] %s3277_s20  ;;  %s3394_s22 = sadd.s32 4294967295, %s3281_s21   ;;  %s3281_s21 = sphi %s3381_s21, %s4116_s21   ;;  %s3277_s20 = sphi %s3379_s20, %s4118_s20   ;;  %s3273_s19 = sphi %s3377_s19, %s4120_s19   ;;  %s3269_s18 = sphi %s3375_s18, %s4119_s18  }
  0x13   : > { %s3397_s23 = sadd.s32 1, %s3281_s21   ;;  %s112_s25 = sadd.s32 1, %s3277_s20 }
  0x14   : > { %4080 = sst [smem:[#allocation13_spill]] %s3397_s23  ;;  %s109_s24 = ssub.s32 %s3281_s21, %s3397_s23 }
  0x15   : > { %p110_p0 = scmp.eq.s32.totalorder %s109_s24, 0  ;;  %p119_p1 = scmp.ne.s32.totalorder %s3277_s20, %s3273_s19 }
  0x16   : > { %p120_p2 = scmp.eq.s32.totalorder %s3281_s21, 0  ;;  %p125_p3 = scmp.ne.s32.totalorder %s3273_s19, %s3269_s18 }
  0x17   : > { %s3407_s26 = scalar_select %p110_p0, %s3277_s20, %s112_s25  }
  0x18   : > { %p121_p4 = por %p120_p2, %p119_p1  ;;  %p126_p5 = scmp.eq.s32.totalorder %s3394_s22, 0 }
  0x19   : > { %4081 = sst [smem:[#allocation14_spill]] %s3407_s26  ;;  %p2999_p6 = scmp.lt.s32.totalorder %s3281_s21, 2 }
  0x1a   : > { %p3411_p7 = por %p126_p5, %p125_p3  ;;  %s3416_s28 = sand.u32 1, %s3277_s20  }
  0x1b   : > { %p3418_p8 = pnand %p2999_p6, %p121_p4  ;;  %s522_s30 = sand.u32 1, %s3281_s21  }
  0x1c   : > { %s4066_s16 = sshll.u32 %s3416_s28, 8  ;;  %s2876_s17 = sshll.u32 %s3281_s21, 8 }
  0x1d   : > { %s526_s18 = scalar_lea.vmem [#allocation5], %s4066_s16  ;;  %s4084_s9 = sld [smem:[#allocation19_spill]] }
  0x1e   : > { %s534_s24 = sshll.u32 %s526_s18, 4  ;;  %s3430_s15 = scalar_lea.sflag [#allocation6], %s522_s30  ;;  %s535_s24 = int_to_ptr.vmem [resolvable:$true] %s534_s24 }
  0x1f   : > { %p3125_p10 = pneg %p3418_p8 }
  0x23   : > { %s531_s23 = scalar_lea.hbm %s4084_s9, %s2876_s17  ;;  %s3128_s26 = scalar_lea.hbm %s4084_s9, 512 }
  0x24   : > { %s532_s20 = sshll.u32 %s531_s23, 4  ;;  %s533_s20 = int_to_ptr.hbm [resolvable:$true] %s532_s20 }
  0x25   : > { %s3121_s14 = sshra.s32 %s533_s20, 4  ;;  %s3122_s14 = int_to_ptr.hbm [resolvable:$true] %s3121_s14 }
  0x26   : > { %s3123_s13 = scalar_lea.hbm %s3122_s14, 256  ;;  %p3129_p13 = scmp.lt.s32.totalorder %s3122_s14, %s4084_s9 }
  0x27   : > { %p3124_p9 = scmp.ne.s32.totalorder %s3122_s14, %s3123_s13  ;;  %p3130_p0 = scmp.lt.s32.totalorder %s3128_s26, %s3123_s13 }
  0x29   : > { %p3126_p11 = pnand %p3125_p10, %p3124_p9  ;;  %p3131_p1 = por %p3130_p0, %p3129_p13 }
  0x2b   : > { %p3127_p12 = pneg %p3126_p11 }
  0x2d   : > { %p3132_p2 = pnand %p3131_p1, %p3127_p12 }
  0x2f   : > { %3135 = shalt.err (!%p3132_p2)
}
  0x30   : > { %s3283_s23 = smov 256   ;;  %s3284_s30 = smov 16  }
  0x31   : > { %2995 = dma.hbm_to_vmem [thread:$0]  (!%p3418_p8), %s533_s20, 4096, %s535_s24, %s3430_s15, %s3283_s23, %s3283_s23, %s3284_s30  }
  0x32   : > { %s4085_s11 = sld [smem:[#allocation21_spill]]  ;;  %s4086_s13 = sshll.u32 %s3416_s28, 8 }
  0x33   : > { %s555_s26 = scalar_lea.vmem [#allocation7], %s4086_s13  ;;  %p2464_p3 = scmp.ge.s32.totalorder %s3281_s21, 1 }
  0x34   : > { %s563_s25 = sshll.u32 %s555_s26, 4  ;;  %p577_p4 = scmp.lt.s32.totalorder %s3281_s21, 3  ;;  %s3453_s25 = int_to_ptr.vmem [resolvable:$true] %s563_s25 }
  0x35   : > { %s2975_s9 = smul.u32 192, %s3416_s28  ;;  %s4088_s3 = sld [smem:[#allocation16_spill]] }
  0x36   : > { %p3458_p5 = pnand %p2464_p3, %p577_p4  ;;  %s2976_s20 = smul.u32 192, %s3281_s21 }
  0x37   : > { %s471_s30 = scalar_lea.vmem [#allocation2], %s2975_s9 }
  0x38   : > { %s560_s0 = scalar_lea.hbm %s4085_s11, %s2876_s17  ;;  %s479_s16 = sshll.u32 %s471_s30, 4  ;;  %s480_s16 = int_to_ptr.vmem [resolvable:$true] %s479_s16 }
  0x39   : > { %s561_s14 = sshll.u32 %s560_s0, 4  ;;  %s468_s0 = scalar_lea.sflag [#allocation3], %s3416_s28  ;;  %s3451_s14 = int_to_ptr.hbm [resolvable:$true] %s561_s14 }
  0x3b   : > { %s476_s23 = scalar_lea.hbm %s4088_s3, %s2976_s20  ;;  %s3158_s8 = scalar_lea.hbm %s4088_s3, 384 }
  0x3c   : > { %s477_s18 = sshll.u32 %s476_s23, 4  ;;  %s478_s18 = int_to_ptr.hbm [resolvable:$true] %s477_s18 }
  0x3d   : > { %s3151_s13 = sshra.s32 %s478_s18, 4  ;;  %s3152_s13 = int_to_ptr.hbm [resolvable:$true] %s3151_s13 }
  0x3e   : > { %s3153_s26 = scalar_lea.hbm %s3152_s13, 192  ;;  %p3159_p12 = scmp.lt.s32.totalorder %s3152_s13, %s4088_s3 }
  0x3f   : > { %p3154_p6 = scmp.ne.s32.totalorder %s3152_s13, %s3153_s26  ;;  %p3160_p13 = scmp.lt.s32.totalorder %s3158_s8, %s3153_s26 }
  0x41   : > { %p3156_p9 = pnand %p3154_p6, %p3125_p10  ;;  %p3161_p0 = por %p3160_p13, %p3159_p12 }
  0x43   : > { %p3157_p11 = pneg %p3156_p9 }
  0x45   : > { %p3162_p1 = pnand %p3161_p0, %p3157_p11 }
  0x47   : > { %3165 = shalt.err (!%p3162_p1)
}
  0x48   : > { %s3285_s9 = smov 192   ;;  %s3286_s28 = smov 12  }
  0x49   : > { %2992 = dma.hbm_to_vmem [thread:$0]  (!%p3418_p8), %s478_s18, 3072, %s480_s16, %s468_s0, %s3285_s9, %s3285_s9, %s3286_s28  }
  0x4a   : > { %s3181_s17 = sshra.s32 %s3451_s14, 4  ;;  %s3188_s30 = scalar_lea.hbm %s4085_s11, 512  ;;  %s3182_s17 = int_to_ptr.hbm [resolvable:$true] %s3181_s17 }
  0x4b   : > { %s3183_s23 = scalar_lea.hbm %s3182_s17, 256  ;;  %p3189_p6 = scmp.lt.s32.totalorder %s3182_s17, %s4085_s11 }
  0x4c   : > { %p3184_p2 = scmp.ne.s32.totalorder %s3182_s17, %s3183_s23  ;;  %p3190_p9 = scmp.lt.s32.totalorder %s3188_s30, %s3183_s23 }
  0x4e   : > { %p3186_p3 = pnand %p3184_p2, %p3125_p10  ;;  %p3191_p11 = por %p3190_p9, %p3189_p6 }
  0x50   : > { %p3187_p4 = pneg %p3186_p3 }
  0x52   : > { %p3192_p12 = pnand %p3191_p11, %p3187_p4 }
  0x54   : > { %3195 = shalt.err (!%p3192_p12)
}
  0x55   : > { %s3287_s16 = smov 64   ;;  %s3288_s18 = smov 4  }
  0x56   : > { %2998 = dma.hbm_to_vmem [thread:$0]  (!%p3418_p8), %s3451_s14, 4096, %s3453_s25, %s3430_s15, %s3287_s16, %s3287_s16, %s3288_s18  }
  0x57   : > { %581 = sbr.rel (%p3458_p5) target bundleno = 2311 (0x907), region = 80  ;;  %s583_s0 = sand.u32 (!%p3458_p5), 1, %s3273_s19  }
  0x58   : > { %s2977_s21 = smul.u32 (!%p3458_p5), 192, %s583_s0  ;;  %s584_s24 = scalar_lea.sflag (!%p3458_p5), [#allocation3], %s583_s0 }
  0x5a   : > { %s3496_s20 = scalar_lea.vmem (!%p3458_p5), [#allocation2], %s2977_s21 }
  0x5c   : > { %3256 = dma.done.wait (%p3411_p7), %s584_s24, 3072  }
  0x5d   : > { %3258 = vsyncadd (%p3411_p7), %s584_s24, 4294964224  ;;  %s593_s9 = sand.u32 1, %s3394_s22   ;;  %s2465_s29 = sshll.u32 %s583_s0, 8 }
  0x5e   : > { %s594_s15 = scalar_lea.sflag [#allocation6], %s593_s9  ;;  %s3503_s14 = scalar_lea.vmem [#allocation5], %s2465_s29 }
  0x5f   : > { %3260 = dma.done.wait (%p3411_p7), %s594_s15, 8192  }
  0x60   : > { %3262 = vsyncadd (%p3411_p7), %s594_s15, 4294959104  ;;  %p691_p8 = scmp.lt.s32.totalorder %s3394_s22, 1  ;;  %s4089_s5 = sld [smem:[#allocation17_spill]] }
  0x61   : > { %s4090_s17 = sld [smem:[#allocation18_spill]]  ;;  %p2470_p7 = scmp.ne.s32.totalorder %s3394_s22, 0 }
  0x62   : > { %s3511_s12 = scalar_select %p691_p8, %s3394_s22, 1 }
  0x63   : > { %s4092_s21 = sld [smem:[#allocation22_spill]] }
  0x64   : > { %s2978_s8 = smul.u32 3, %s3511_s12  ;;  %s2878_s30 = sshll.u32 %s3511_s12, 6 }
  0x65   : > { %s711_s27 = scalar_lea.vmem %s4054_s7, %s3511_s12  ;;  %s2469_s13 = sshll.u32 %s3511_s12, 2 }
  0x66   : > { %s3526_s16 = scalar_lea.vmem %s4089_s5, %s2878_s30  ;;  %s3535_s15 = scalar_lea.vmem %s4051_s4, %s2978_s8 }
  0x67   : > { %s714_s3 = scalar_lea.vmem %s4090_s17, %s3511_s12  ;;  %s4091_s5 = sld [smem:[#allocation20_spill]] }
  0x68   : > { %s3555_s8 = scalar_lea.vmem [#allocation7], %s2465_s29  ;;  %s4093_s28 = sld [smem:[#allocation15_spill]] (!%p2470_p7) }
  0x69   : > { %s721_s24 = scalar_lea.vmem %s4092_s21, %s3511_s12  ;;  %726 = sbr.rel (%p2470_p7) target bundleno = 113 (0x71), region = 96 }
  0x6d   : > { %s3549_s11 = scalar_lea.vmem %s4091_s5, %s2469_s13 }
  0x6e   : > { %v727_v0 = vld [vmem:[%s4093_s28] sm:$0xff]  ;;  %v728_v1 = vld [vmem:[%s4093_s28 + $0x8] sm:$0xff] }
  0x6f   : > { %729 = vst [vmem:[#allocation8] sm:$0xff] %v727_v0 }
  0x70   : > { %730 = vst [vmem:[#allocation8 + $0x8] sm:$0xff] %v728_v1 }
  0x71 PF: > { %v3289_v4 = vmov 128.0   ;;  %v2557_v19 = vld [vmem:[%s3496_s20 + $0xa8] sm:$0xf]  ;;  %v2901_v20 = vld [vmem:[%s3496_s20 + $0xb0] sm:$0xf0]  ;;  %s4094_s29 = scalar_lea.vmem %s4048_s1, %s3511_s12  ;;  %s4095_s13 = scalar_lea.vmem %s4049_s2, %s3511_s12  ;;  %vm1017_vm7 = vcmask 523264  }
  0x72   : > { %3057 = vrcp.f32 %v3289_v4  ;;  %v2900_v21 = vld [vmem:[%s3496_s20 + $0xac] sm:$0xf]  ;;  %v2558_v22 = vor.u32 %v2901_v20, %v2557_v19  ;;  %v2559_v23 = vld [vmem:[%s3496_s20 + $0xb4] sm:$0xf0]  ;;  %v2565_v24 = vld [vmem:[%s3496_s20 + $0xb0] sm:$0xf]  ;;  %s4096_s18 = scalar_lea.vmem %s4053_s6, %s3511_s12 }
  0x73   : > { %v2902_v25 = vld [vmem:[%s3496_s20 + $0xb8] sm:$0xf0]  ;;  %v2562_v26 = vor.u32 %v2900_v21, %v2559_v23  ;;  %v2545_v28 = vld [vmem:[%s3496_s20 + $0x90] sm:$0xf]  ;;  %v2897_v30 = vld [vmem:[%s3496_s20 + $0x94] sm:$0xf] }
  0x74   : > { %v2566_v27 = vor.u32 %v2902_v25, %v2565_v24  ;;  %967 = vmatpush.bf16.msra.mxu0 %v2558_v22  ;;  %v2898_v29 = vld [vmem:[%s3496_s20 + $0x98] sm:$0xf0]  ;;  %v2547_v32 = vld [vmem:[%s3496_s20 + $0x9c] sm:$0xf0]  ;;  %v2553_v33 = vld [vmem:[%s3496_s20 + $0x98] sm:$0xf] }
  0x75   : > { %981 = vmatpush.bf16.msra.mxu1 %v2562_v26  ;;  %v2546_v31 = vor.u32 %v2898_v29, %v2545_v28  ;;  %v2899_v34 = vld [vmem:[%s3496_s20 + $0xa0] sm:$0xf0]  ;;  %v2550_v35 = vor.u32 %v2897_v30, %v2547_v32  ;;  %v2533_v37 = vld [vmem:[%s3496_s20 + $0x78] sm:$0xf]  ;;  %v2894_v39 = vld [vmem:[%s3496_s20 + $0x7c] sm:$0xf] }
  0x76   : > { %v3564_v2 = vld [vmem:[#allocation8] sm:$0xff]  ;;  %995 = vmatpush.bf16.msra.mxu2 %v2566_v27  ;;  %v2554_v36 = vor.u32 %v2899_v34, %v2553_v33  ;;  %v2535_v41 = vld [vmem:[%s3496_s20 + $0x84] sm:$0xf0]  ;;  %v2896_v43 = vld [vmem:[%s3496_s20 + $0x88] sm:$0xf0]  ;;  %vm1110_vm8 = vcmask 1043456  }
  0x77   : > { %741 = vadd.xlane.f32.xlu0 %v3564_v2  ;;  %v3567_v3 = vld [vmem:[#allocation8 + $0x8] sm:$0xff]  ;;  %v2895_v38 = vld [vmem:[%s3496_s20 + $0x80] sm:$0xf0]  ;;  %v2541_v42 = vld [vmem:[%s3496_s20 + $0x80] sm:$0xf]  ;;  %v2538_v44 = vor.u32 %v2894_v39, %v2535_v41  ;;  %vm1056_vm10 = vcmask 64512  }
  0x78   : > { %v3058_v5 = vpop.eup %3057  ;;  %968 = vmatpush.bf16.msra.mxu0 %v2546_v31  ;;  %v2534_v40 = vor.u32 %v2895_v38, %v2533_v37  ;;  %v2542_v45 = vor.u32 %v2896_v43, %v2541_v42  ;;  %v2521_v46 = vld [vmem:[%s3496_s20 + $0x60] sm:$0xf]  ;;  %v2892_v47 = vld [vmem:[%s3496_s20 + $0x68] sm:$0xf0]  ;;  %v2891_v48 = vld [vmem:[%s3496_s20 + $0x64] sm:$0xf] }
  0x79   : > { %v746_v6 = vmul.f32 128.0, %v3058_v5  ;;  %vm750_vm0 = vweird.f32 %v3058_v5  ;;  %982 = vmatpush.bf16.msra.mxu1 %v2550_v35  ;;  %v2522_v49 = vor.u32 %v2892_v47, %v2521_v46  ;;  %v2523_v50 = vld [vmem:[%s3496_s20 + $0x6c] sm:$0xf0]  ;;  %v2529_v51 = vld [vmem:[%s3496_s20 + $0x68] sm:$0xf]  ;;  %p2871_p10 = scmp.ne.s32.totalorder %s3394_s22, 1 }
  0x7a   : > { %996 = vmatpush.bf16.msra.mxu2 %v2554_v36  ;;  %v2893_v52 = vld [vmem:[%s3496_s20 + $0x70] sm:$0xf0]  ;;  %v2526_v53 = vor.u32 %v2891_v48, %v2523_v50  ;;  %v2509_v55 = vld [vmem:[%s3496_s20 + $0x48] sm:$0xf]  ;;  %v2888_v57 = vld [vmem:[%s3496_s20 + $0x4c] sm:$0xf] }
  0x7b   : > { %v747_v7 = vsub.f32 1.0, %v746_v6  ;;  %v2530_v54 = vor.u32 %v2893_v52, %v2529_v51  ;;  %v2889_v56 = vld [vmem:[%s3496_s20 + $0x50] sm:$0xf0]  ;;  %v2511_v59 = vld [vmem:[%s3496_s20 + $0x54] sm:$0xf0]  ;;  %s4114_s5 = sld [smem:[#allocation24_spill]] (!%p2871_p10) }
  0x7c   : > { %969 = vmatpush.bf16.msra.mxu0 %v2534_v40  ;;  %v2510_v58 = vor.u32 %v2889_v56, %v2509_v55  ;;  %v2517_v60 = vld [vmem:[%s3496_s20 + $0x50] sm:$0xf]  ;;  %v2890_v61 = vld [vmem:[%s3496_s20 + $0x58] sm:$0xf0]  ;;  %v2514_v62 = vor.u32 %v2888_v57, %v2511_v59  ;;  %v2885_v4 = vld [vmem:[%s3496_s20 + $0x34] sm:$0xf] }
  0x7d   : > { %v748_v8 = vmul.f32 %v3058_v5, %v747_v7  ;;  %983 = vmatpush.bf16.msra.mxu1 %v2538_v44  ;;  %v2518_v63 = vor.u32 %v2890_v61, %v2517_v60  ;;  %v2497_v0 = vld [vmem:[%s3496_s20 + $0x30] sm:$0xf]  ;;  %v2886_v1 = vld [vmem:[%s3496_s20 + $0x38] sm:$0xf0]  ;;  %v2499_v6 = vld [vmem:[%s3496_s20 + $0x3c] sm:$0xf0] }
  0x7e   : > { %997 = vmatpush.bf16.msra.mxu2 %v2542_v45  ;;  %v2505_v7 = vld [vmem:[%s3496_s20 + $0x38] sm:$0xf]  ;;  %v2493_v19 = vld [vmem:[%s3496_s20 + $0x20] sm:$0xf]  ;;  %v2884_v20 = vld [vmem:[%s3496_s20 + $0x28] sm:$0xf0] }
  0x7f   : > { %743 = vadd.xlane.f32.xlu0 %v3567_v3  ;;  %v749_v9 = vadd.f32 %v3058_v5, %v748_v8  ;;  %v2887_v8 = vld [vmem:[%s3496_s20 + $0x40] sm:$0xf0]  ;;  %v2494_v22 = vor.u32 %v2884_v20, %v2493_v19  ;;  %v2473_v23 = vld [vmem:[%s3496_s20] sm:$0xf]  ;;  %v2880_v24 = vld [vmem:[%s3496_s20 + $0x8] sm:$0xf0] }
  0x80   : > { %970 = vmatpush.bf16.msra.mxu0 %v2522_v49  ;;  %v2879_v25 = vld [vmem:[%s3496_s20 + $0x4] sm:$0xf]  ;;  %v2474_v27 = vor.u32 %v2880_v24, %v2473_v23  ;;  %v2475_v28 = vld [vmem:[%s3496_s20 + $0xc] sm:$0xf0]  ;;  %v2481_v29 = vld [vmem:[%s3496_s20 + $0x8] sm:$0xf] }
  0x81   : > { %v3570_v10 = vsel %vm750_vm0, %v3058_v5, %v749_v9  ;;  %984 = vmatpush.bf16.msra.mxu1 %v2526_v53  ;;  %v2498_v5 = vor.u32 %v2886_v1, %v2497_v0  ;;  %v2502_v9 = vor.u32 %v2885_v4, %v2499_v6  ;;  %v2881_v30 = vld [vmem:[%s3496_s20 + $0x10] sm:$0xf0]  ;;  %v2478_v32 = vor.u32 %v2879_v25, %v2475_v28  ;;  %v3051_v51 = vld [vmem:[%s4094_s29] ss:$0 sm:$0xff] }
  0x82   : > { %998 = vmatpush.bf16.msra.mxu2 %v2530_v54  ;;  %v2482_v33 = vor.u32 %v2881_v30, %v2481_v29  ;;  %v3052_v56 = vld [vmem:[%s4095_s13] ss:$0 sm:$0xff] }
  0x83   : > { %v831_v60 = vld [vmem:[%s3535_s15] sm:$0x7]  ;;  %s3290_s15 = smov 64  }
  0x84   : > { %971 = vmatpush.bf16.msra.mxu0 %v2510_v58  ;;  %v833_v61 = vperm.slane %v831_v60, 0  ;;  %v835_v6 = vperm.slane %v831_v60, 2 }
  0x85   : > { %985 = vmatpush.bf16.msra.mxu1 %v2514_v62  ;;  %v834_v62 = vperm.slane %v831_v60, 1 }
  0x86   : > { %999 = vmatpush.bf16.msra.mxu2 %v2518_v63 }
  0x88   : > { %972 = vmatpush.bf16.msra.mxu0 %v2498_v5 }
  0x89   : > { %986 = vmatpush.bf16.msra.mxu1 %v2502_v9 }
  0xea   : > { %v742_v11 = vpop.xlane.xlu0 %741 }
  0xeb   : > { %v752_v12 = vmul.f32 %v3570_v10, %v742_v11  ;;  %v2506_v11 = vor.u32 %v2887_v8, %v2505_v7 }
  0xed   : > { %v3574_v13 = vsub.f32 %v3564_v2, %v752_v12  ;;  %1000 = vmatpush.bf16.msra.mxu2 %v2506_v11  ;;  %v2485_v12 = vld [vmem:[%s3496_s20 + $0x18] sm:$0xf] }
  0xef   : > { %v756_v14 = vmul.f32 %v3574_v13, %v3574_v13 }
  0xf1   : > { %758 = vadd.xlane.f32.xlu1 %v756_v14  ;;  %v2883_v14 = vld [vmem:[%s3496_s20 + $0x20] sm:$0xf0]  ;;  %1001 = vmatpush.bf16.msra.mxu2 %v2494_v22 }
  0xf2   : > { %v744_v15 = vpop.xlane.xlu0 %743 }
  0xf3   : > { %v753_v16 = vmul.f32 %v3570_v10, %v744_v15  ;;  %v2882_v15 = vld [vmem:[%s3496_s20 + $0x1c] sm:$0xf] }
  0xf5   : > { %v3580_v17 = vsub.f32 %v3567_v3, %v753_v16  ;;  %v2486_v16 = vor.u32 %v2883_v14, %v2485_v12  ;;  %1002 = vmatpush.bf16.msra.mxu2 %v2482_v33 }
  0xf7   : > { %v757_v18 = vmul.f32 %v3580_v17, %v3580_v17  ;;  %973 = vmatpush.bf16.msra.mxu0 %v2486_v16 }
  0xf9   : > { %760 = vadd.xlane.f32.xlu1 %v757_v18  ;;  %v2487_v18 = vld [vmem:[%s3496_s20 + $0x24] sm:$0xf0] }
  0xfa   : > { %v2490_v21 = vor.u32 %v2882_v15, %v2487_v18 }
  0xfb   : > { %974 = vmatpush.bf16.msra.mxu0 %v2474_v27 }
  0xfc   : > { %987 = vmatpush.bf16.msra.mxu1 %v2490_v21 }
 0x100   : > { %988 = vmatpush.bf16.msra.mxu1 %v2478_v32 }
 0x164   : > { %v759_v26 = vpop.xlane.xlu1 %758 }
 0x165   : > { %v762_v31 = vmul.f32 %v759_v26, %v3570_v10 }
 0x167   : > { %v764_v34 = vadd.f32 1e-05, %v762_v31 }
 0x169   : > { %3059 = vrsqrt.f32 %v764_v34  ;;  %vm772_vm2 = vweird.f32 %v764_v34 }
 0x16c   : > { %v761_v35 = vpop.xlane.xlu1 %760 }
 0x16d   : > { %v763_v36 = vmul.f32 %v761_v35, %v3570_v10 }
 0x16f   : > { %v3060_v37 = vpop.eup %3059  ;;  %v765_v38 = vadd.f32 1e-05, %v763_v36 }
 0x170   : > { %v767_v39 = vmul.f32 %v3060_v37, %v764_v34  ;;  %vm773_vm1 = vweird.f32 %v3060_v37 }
 0x171   : > { %3061 = vrsqrt.f32 %v765_v38  ;;  %vm774_vm3 = vmor %vm772_vm2, %vm773_vm1  ;;  %vm782_vm5 = vweird.f32 %v765_v38 }
 0x172   : > { %v768_v40 = vmul.f32 %v3060_v37, %v767_v39 }
 0x174   : > { %v769_v41 = vmul.f32 0.5, %v768_v40  ;;  %v733_v40 = vlaneseq }
 0x176   : > { %v770_v42 = vsub.f32 1.5, %v769_v41 }
 0x177   : > { %v3062_v43 = vpop.eup %3061 }
 0x178   : > { %v771_v44 = vmul.f32 %v3060_v37, %v770_v42  ;;  %v777_v45 = vmul.f32 %v3062_v43, %v765_v38  ;;  %vm783_vm4 = vweird.f32 %v3062_v43  ;;  %v734_v42 = vshrl.u32 %v733_v40, 7 }
 0x179   : > { %vm784_vm6 = vmor %vm782_vm5, %vm783_vm4 }
 0x17a   : > { %v778_v46 = vmul.f32 %v3062_v43, %v777_v45  ;;  %v775_v47 = vsel %vm774_vm3, %v3060_v37, %v771_v44  ;;  %v3291_v45 = vmov -1e+30  }
 0x17b   : > { %v786_v50 = vmul.f32 %v775_v47, %v3574_v13 }
 0x17c   : > { %v779_v48 = vmul.f32 0.5, %v778_v46 }
 0x17d   : > { %v791_v55 = vmul.f32 %v3051_v51, %v786_v50 }
 0x17e   : > { %v780_v49 = vsub.f32 1.5, %v779_v48 }
 0x17f   : > { %v796_v13 = vadd.f32 %v3052_v56, %v791_v55 }
 0x180   : > { %v781_v52 = vmul.f32 %v3062_v43, %v780_v49 }
 0x182   : > { %v785_v53 = vsel %vm784_vm6, %v3062_v43, %v781_v52  ;;  %v736_v43 = vand.u32 127, %v733_v40 }
 0x183   : > { %v787_v54 = vmul.f32 %v785_v53, %v3580_v17 }
 0x184   : > { %vm737_vm9 = vcmp.le.s32.totalorder %v736_v43, %v734_v42 }
 0x185   : > { %v792_v57 = vmul.f32 %v3051_v51, %v787_v54  ;;  %v738_v46 = vsel %vm737_vm9, 0.0, %v3291_v45 }
 0x187   : > { %v797_v58 = vadd.f32 %v3052_v56, %v792_v57 }
 0x189   : > { %v798_v59 = vpack.c.bf16 %v797_v58, %v796_v13 }
 0x18b   : > { %975 = vmatmul.bf16.vlgmr.msra.gmra.mxu0 %v798_v59  ;;  %989 = vmatmul.bf16.vlgmr.msra.gmra.mxu1 %v798_v59 }
 0x18c   : > { %1003 = vmatmul.bf16.vlgmr.msra.gmra.mxu2 %v798_v59 }
 0x208   : > { %v976_v63 = vpop.f32.mrf.mxu0  ;;  %v990_v0 = vpop.f32.mrf.mxu1 }
 0x209   : > { %v977_v1 = vadd.f32 %v976_v63, %v833_v61  ;;  %v991_v17 = vadd.f32 %v990_v0, %v834_v62 }
 0x20b   : > { %v1009_v4 = vmul.f32 0.125, %v977_v1  ;;  %v1013_v5 = vpack.c.bf16 %v991_v17, %v991_v17 }
 0x20d   : > { %v1022_v7 = vsel %vm1017_vm7, %v1013_v5, 0  ;;  %v1152_v8 = vunpack.c.l.b16 %v1013_v5  ;;  %v1011_v9 = vpack.c.bf16 %v1009_v4, %v1009_v4 }
 0x20e   : > { %1031 = vmatpush.bf16.xpose.msra.mxu3 %v1022_v7 }
 0x20f   : > { %v1004_v11 = vpop.f32.mrf.mxu2  ;;  %v1153_v12 = vpack.c.b16 %v1152_v8, %v1152_v8  ;;  %v1147_v21 = vunpack.c.l.b16 %v1011_v9 }
 0x210   : > { %v1005_v14 = vadd.f32 %v1004_v11, %v835_v6  ;;  %v978_v15 = vpop.f32.mrf.mxu0  ;;  %v992_v16 = vpop.f32.mrf.mxu1 }
 0x211   : > { %v979_v18 = vadd.f32 %v978_v15, %v833_v61  ;;  %v993_v19 = vadd.f32 %v992_v16, %v834_v62  ;;  %1154 = vrot.lane.b32.xlu2 %v1153_v12, %s3290_s15  ;;  %v1148_v31 = vpack.c.b16 %v1147_v21, %v1147_v21 }
 0x212   : > { %v1015_v20 = vpack.c.bf16 %v1005_v14, %v1005_v14 }
 0x213   : > { %v1010_v22 = vmul.f32 0.125, %v979_v18  ;;  %v1014_v23 = vpack.c.bf16 %v993_v19, %v993_v19 }
 0x214   : > { %v1112_v27 = vsel %vm1110_vm8, %v1015_v20, 0  ;;  %v1255_v58 = vunpack.c.l.b16 %v1015_v20 }
 0x215   : > { %v1012_v24 = vpack.c.bf16 %v1010_v22, %v1010_v22  ;;  %v1181_v25 = vunpack.c.l.b16 %v1014_v23  ;;  %2567 = vmatmul.msk.bf16.vlgmr.msra.gmra.mxu3 %vm1017_vm7, %v1011_v9  ;;  %v1041_v26 = vsel %vm1017_vm7, %v1014_v23, 0 }
 0x216   : > { %1050 = vmatpush.bf16.xpose.msrb.mxu3 %v1041_v26  ;;  %v1256_v61 = vpack.c.b16 %v1255_v58, %v1255_v58 }
 0x217   : > { %v1176_v28 = vunpack.c.l.b16 %v1012_v24  ;;  %v1182_v29 = vpack.c.b16 %v1181_v25, %v1181_v25  ;;  %v1006_v30 = vpop.f32.mrf.mxu2 }
 0x218   : > { %v1007_v32 = vadd.f32 %v1006_v30, %v835_v6 }
 0x219   : > { %1183 = vrot.lane.b32.xlu0 %v1182_v29, %s3290_s15  ;;  %1149 = vrot.lane.b32.xlu2 %v1148_v31, %s3290_s15  ;;  %v1177_v33 = vpack.c.b16 %v1176_v28, %v1176_v28 }
 0x21a   : > { %v3654_v34 = vpack.c.bf16 %v1007_v32, %v1007_v32 }
 0x21b   : > { %1178 = vrot.lane.b32.xlu1 %v1177_v33, %s3290_s15 }
 0x21c   : > { %v1131_v35 = vsel %vm1110_vm8, %v3654_v34, 0  ;;  %v1279_v21 = vunpack.c.l.b16 %v3654_v34 }
 0x21d   : > { %1140 = vmatpush.bf16.msrb.mxu0 %v1131_v35 }
 0x21e   : > { %1121 = vmatpush.bf16.msra.mxu3 %v1112_v27  ;;  %v1280_v22 = vpack.c.b16 %v1279_v21, %v1279_v21 }
 0x225   : > { %2568 = vmatmul.msk.bf16.vlgmr.msrb.gmra.mxu3 %vm1017_vm7, %v1012_v24 }
 0x26b   : > { %v1155_v36 = vpop.permute.xlu2 %1154 }
 0x26c   : > { %v1160_v37 = vsel %vm1017_vm7, %v1155_v36, 0 }
 0x26d   : > { %1169 = vmatpush.bf16.xpose.msrb.mxu2 %v1160_v37 }
 0x273   : > { %v1150_v38 = vpop.permute.xlu2 %1149 }
 0x274   : > { %2571 = vmatmul.msk.bf16.vlgmr.msrb.gmra.mxu2 %vm1017_vm7, %v1150_v38 }
 0x28b   : > { %v1184_v39 = vpop.permute.xlu0 %1183 }
 0x28c   : > { %v1189_v41 = vsel %vm1017_vm7, %v1184_v39, 0 }
 0x28d   : > { %1198 = vmatpush.bf16.xpose.msra.mxu2 %v1189_v41  ;;  %v1179_v44 = vpop.permute.xlu1 %1178 }
 0x294   : > { %2572 = vmatmul.msk.bf16.vlgmr.msra.gmra.mxu2 %vm1017_vm7, %v1179_v44 }
 0x298   : > { %v1033_v47 = vpop.f32.mrf.mxu3 }
 0x299   : > { %v1034_v48 = vadd.f32 %v1033_v47, %v738_v46 }
 0x29b   : > { %v1057_v49 = vsel %vm1056_vm10, %v1034_v48, -inf }
 0x29c   : > { %1058 = vmax.xlane.f32.xlu2 %v1057_v49 }
 0x2a0   : > { %v1035_v50 = vpop.f32.mrf.mxu3 }
 0x2a8   : > { %v1052_v51 = vpop.f32.mrf.mxu3 }
 0x2a9   : > { %v1053_v52 = vadd.f32 %v1052_v51, %v738_v46 }
 0x2ab   : > { %v1060_v53 = vsel %vm1056_vm10, %v1053_v52, -inf }
 0x2ac   : > { %1061 = vmax.xlane.f32.xlu0 %v1060_v53 }
 0x2b0   : > { %v1054_v54 = vpop.f32.mrf.mxu3 }
 0x2f7   : > { %v1171_v55 = vpop.f32.mrf.mxu2 }
 0x2f8   : > { %v1172_v56 = vadd.f32 %v1171_v55, %v738_v46 }
 0x2fa   : > { %v1204_v57 = vsel %vm1056_vm10, %v1172_v56, -inf }
 0x2fb   : > { %1205 = vmax.xlane.f32.xlu1 %v1204_v57 }
 0x2ff   : > { %v1173_v13 = vpop.f32.mrf.mxu2 }
 0x30f   : > { %v1059_v59 = vpop.xlane.xlu2 %1058 }
 0x310   : > { %v1063_v60 = vsub.f32 %v1034_v48, %v1059_v59 }
 0x312   : > { %v1065_v62 = vmul.f32 1.442695, %v1063_v60 }
 0x314   : > { %1257 = vrot.lane.b32.xlu1 %v1256_v61, %s3290_s15  ;;  %3063 = vpow2.f32 %v1065_v62 }
 0x317   : > { %v1200_v63 = vpop.f32.mrf.mxu2 }
 0x318   : > { %v1201_v0 = vadd.f32 %v1200_v63, %v738_v46 }
 0x31a   : > { %v1207_v1 = vsel %vm1056_vm10, %v1201_v0, -inf  ;;  %v3064_v17 = vpop.eup %3063 }
 0x31b   : > { %1208 = vmax.xlane.f32.xlu2 %v1207_v1  ;;  %v1069_v8 = vsel %vm1056_vm10, %v3064_v17, 0.0 }
 0x31f   : > { %v1202_v4 = vpop.f32.mrf.mxu2  ;;  %v1062_v5 = vpop.xlane.xlu0 %1061 }
 0x320   : > { %v1064_v6 = vsub.f32 %v1053_v52, %v1062_v5 }
 0x322   : > { %v1067_v7 = vmul.f32 1.442695, %v1064_v6 }
 0x323   : > { %1070 = vadd.xlane.f32.xlu2 %v1069_v8 }
 0x324   : > { %3065 = vpow2.f32 %v1067_v7 }
 0x32a   : > { %v3066_v9 = vpop.eup %3065 }
 0x32b   : > { %v1072_v11 = vsel %vm1056_vm10, %v3066_v9, 0.0 }
 0x32c   : > { %1073 = vadd.xlane.f32.xlu2 %v1072_v11 }
 0x36e   : > { %v1206_v12 = vpop.xlane.xlu1 %1205 }
 0x36f   : > { %v1210_v14 = vsub.f32 %v1172_v56, %v1206_v12 }
 0x371   : > { %v1212_v15 = vmul.f32 1.442695, %v1210_v14 }
 0x373   : > { %3067 = vpow2.f32 %v1212_v15 }
 0x379   : > { %v3671_v16 = vpop.eup %3067 }
 0x37a   : > { %v1216_v18 = vsel %vm1056_vm10, %v3671_v16, 0.0 }
 0x37b   : > { %1217 = vadd.xlane.f32.xlu0 %v1216_v18 }
 0x386   : > { %v1258_v19 = vpop.permute.xlu1 %1257 }
 0x387   : > { %v1263_v20 = vsel %vm1110_vm8, %v1258_v19, 0 }
 0x388   : > { %1272 = vmatpush.bf16.msrb.mxu3 %v1263_v20 }
 0x38e   : > { %v1209_v23 = vpop.xlane.xlu2 %1208 }
 0x38f   : > { %v1211_v24 = vsub.f32 %v1201_v0, %v1209_v23  ;;  %1281 = vrot.lane.b32.xlu0 %v1280_v22, %s3290_s15 }
 0x391   : > { %v1214_v25 = vmul.f32 1.442695, %v1211_v24 }
 0x393   : > { %3069 = vpow2.f32 %v1214_v25 }
 0x396   : > { %v1071_v26 = vpop.xlane.xlu2 %1070 }
 0x397   : > { %3071 = vrcp.f32 %v1071_v26  ;;  %v1086_v33 = vand.u32 2147483648, %v1071_v26  ;;  %v1084_v35 = vand.u32 2147483647, %v1071_v26  ;;  %vm1080_vm12 = vweird.f32 %v1071_v26 }
 0x399   : > { %v3678_v27 = vpop.eup %3069  ;;  %v1087_v37 = vor.u32 1.1754944e-38, %v1086_v33  ;;  %vm1085_vm14 = vcmp.eq.f32.partialorder %v1084_v35, 8.507059e+37  ;;  %v2904_v33 = vld [vmem:[%s3526_s16 + $0x8] sm:$0xff] }
 0x39a   : > { %v1219_v28 = vsel %vm1056_vm10, %v3678_v27, 0.0 }
 0x39b   : > { %1220 = vadd.xlane.f32.xlu2 %v1219_v28  ;;  %v2909_v28 = vld [vmem:[%s3526_s16 + $0x30] sm:$0xff] }
 0x39d   : > { %v3072_v29 = vpop.eup %3071 }
 0x39e   : > { %v1076_v30 = vmul.f32 %v3072_v29, %v1071_v26  ;;  %vm1081_vm11 = vweird.f32 %v3072_v29  ;;  %v2910_v26 = vld [vmem:[%s3526_s16 + $0x38] sm:$0xff] }
 0x39f   : > { %v1074_v31 = vpop.xlane.xlu2 %1073  ;;  %vm1082_vm13 = vmor %vm1080_vm12, %vm1081_vm11  ;;  %1381 = vmatpush.bf16.msrb.mxu1 %v2910_v26  ;;  %v2934_v26 = vld [vmem:[%s3503_s14 + $0xb4] sm:$0xf0] }
 0x3a0   : > { %v1077_v32 = vsub.f32 1.0, %v1076_v30  ;;  %3073 = vrcp.f32 %v1074_v31  ;;  %v1101_v44 = vand.u32 2147483648, %v1074_v31  ;;  %v1099_v47 = vand.u32 2147483647, %v1074_v31  ;;  %v2908_v30 = vld [vmem:[%s3526_s16 + $0x28] sm:$0xff] }
 0x3a1   : > { %vm1095_vm0 = vweird.f32 %v1074_v31 }
 0x3a2   : > { %v1078_v34 = vmul.f32 %v3072_v29, %v1077_v32  ;;  %v1102_v49 = vor.u32 1.1754944e-38, %v1101_v44  ;;  %vm1100_vm2 = vcmp.eq.f32.partialorder %v1099_v47, 8.507059e+37  ;;  %v2905_v32 = vld [vmem:[%s3526_s16 + $0x10] sm:$0xff]  ;;  %v3053_v44 = vld [vmem:[%s4096_s18] ss:$0 sm:$0xff] }
 0x3a3   : > { %1382 = vmatpush.bf16.msrb.mxu1 %v2909_v28 }
 0x3a4   : > { %v1079_v36 = vadd.f32 %v3072_v29, %v1078_v34 }
 0x3a6   : > { %v3074_v38 = vpop.eup %3073  ;;  %v1083_v39 = vsel %vm1082_vm13, %v3072_v29, %v1079_v36 }
 0x3a7   : > { %v1088_v40 = vsel %vm1085_vm14, %v1087_v37, %v1083_v39  ;;  %v1091_v41 = vmul.f32 %v3074_v38, %v1074_v31  ;;  %vm1096_vm15 = vweird.f32 %v3074_v38  ;;  %1383 = vmatpush.bf16.msrb.mxu1 %v2908_v30  ;;  %v2906_v31 = vld [vmem:[%s3526_s16 + $0x18] sm:$0xff]  ;;  %v2903_v37 = vld [vmem:[%s3526_s16] sm:$0xff]  ;;  %v2932_v30 = vld [vmem:[%s3503_s14 + $0xac] sm:$0xf] }
 0x3a8   : > { %v1089_v42 = vmul.f32 %v3064_v17, %v1088_v40  ;;  %vm1097_vm1 = vmor %vm1095_vm0, %vm1096_vm15 }
 0x3a9   : > { %v1092_v43 = vsub.f32 1.0, %v1091_v41 }
 0x3aa   : > { %v1105_v45 = vpack.c.bf16 %v1089_v42, %v1089_v42 }
 0x3ab   : > { %v1093_v46 = vmul.f32 %v3074_v38, %v1092_v43 }
 0x3ac   : > { %2569 = vmatmul.msk.bf16.vlgmr.msra.gmra.mxu3 %vm1056_vm10, %v1105_v45 }
 0x3ad   : > { %v1094_v48 = vadd.f32 %v3074_v38, %v1093_v46 }
 0x3af   : > { %v1098_v50 = vsel %vm1097_vm1, %v3074_v38, %v1094_v48 }
 0x3b0   : > { %v1103_v51 = vsel %vm1100_vm2, %v1102_v49, %v1098_v50 }
 0x3b1   : > { %v1104_v52 = vmul.f32 %v3066_v9, %v1103_v51 }
 0x3b3   : > { %v1106_v53 = vpack.c.bf16 %v1104_v52, %v1104_v52 }
 0x3b5   : > { %2570 = vmatmul.msk.bf16.vlgmr.msrb.gmra.mxu0 %vm1056_vm10, %v1106_v53 }
 0x3ee   : > { %v1218_v54 = vpop.xlane.xlu0 %1217 }
 0x3ef   : > { %3075 = vrcp.f32 %v1218_v54  ;;  %v1233_v13 = vand.u32 2147483648, %v1218_v54  ;;  %v1231_v59 = vand.u32 2147483647, %v1218_v54  ;;  %vm1227_vm4 = vweird.f32 %v1218_v54 }
 0x3f1   : > { %v1234_v61 = vor.u32 1.1754944e-38, %v1233_v13  ;;  %vm1232_vm6 = vcmp.eq.f32.partialorder %v1231_v59, 8.507059e+37  ;;  %v2941_v13 = vld [vmem:[%s3503_s14 + $0xec] sm:$0xf0] }
 0x3f5   : > { %v3076_v55 = vpop.eup %3075 }
 0x3f6   : > { %v1223_v56 = vmul.f32 %v3076_v55, %v1218_v54  ;;  %vm1228_vm3 = vweird.f32 %v3076_v55 }
 0x3f7   : > { %vm1229_vm5 = vmor %vm1227_vm4, %vm1228_vm3 }
 0x3f8   : > { %v1224_v57 = vsub.f32 1.0, %v1223_v56 }
 0x3fa   : > { %v1225_v58 = vmul.f32 %v3076_v55, %v1224_v57  ;;  %v2721_v57 = vld [vmem:[%s3503_s14 + $0xe0] sm:$0xf] }
 0x3fb   : > { %v2722_v59 = vor.u32 %v2941_v13, %v2721_v57  ;;  %v2641_v13 = vld [vmem:[%s3503_s14 + $0x40] sm:$0xf] }
 0x3fc   : > { %v1226_v60 = vadd.f32 %v3076_v55, %v1225_v58  ;;  %v2939_v58 = vld [vmem:[%s3503_s14 + $0xe4] sm:$0xf] }
 0x3fd   : > { %1652 = vmatpush.bf16.msrb.mxu2 %v2722_v59  ;;  %v2919_v59 = vld [vmem:[%s3503_s14 + $0x44] sm:$0xf] }
 0x3fe   : > { %v1230_v62 = vsel %vm1229_vm5, %v3076_v55, %v1226_v60  ;;  %v2723_v60 = vld [vmem:[%s3503_s14 + $0xf0] sm:$0xf0] }
 0x3ff   : > { %v1235_v63 = vsel %vm1232_vm6, %v1234_v61, %v1230_v62  ;;  %v2729_v61 = vld [vmem:[%s3503_s14 + $0xe8] sm:$0xf]  ;;  %v2942_v62 = vld [vmem:[%s3503_s14 + $0xf4] sm:$0xf0] }
 0x400   : > { %v1236_v0 = vmul.f32 %v3671_v16, %v1235_v63  ;;  %v2726_v63 = vor.u32 %v2939_v58, %v2723_v60  ;;  %v2921_v58 = vld [vmem:[%s3503_s14 + $0x4c] sm:$0xf0] }
 0x401   : > { %v1282_v1 = vpop.permute.xlu0 %1281  ;;  %v2642_v60 = vor.u32 %v2921_v58, %v2641_v13 }
 0x402   : > { %v1287_v17 = vsel %vm1110_vm8, %v1282_v1, 0  ;;  %v1252_v4 = vpack.c.bf16 %v1236_v0, %v1236_v0  ;;  %v2730_v0 = vor.u32 %v2942_v62, %v2729_v61  ;;  %v2940_v1 = vld [vmem:[%s3503_s14 + $0xec] sm:$0xf]  ;;  %1666 = vmatpush.bf16.msra.mxu3 %v2726_v63  ;;  %v2643_v61 = vld [vmem:[%s3503_s14 + $0x50] sm:$0xf0] }
 0x403   : > { %1296 = vmatpush.bf16.msra.mxu0 %v1287_v17  ;;  %v2731_v17 = vld [vmem:[%s3503_s14 + $0xf8] sm:$0xf0]  ;;  %v2649_v62 = vld [vmem:[%s3503_s14 + $0x48] sm:$0xf]  ;;  %v2922_v63 = vld [vmem:[%s3503_s14 + $0x54] sm:$0xf0] }
 0x404   : > { %2573 = vmatmul.msk.bf16.vlgmr.msrb.gmra.mxu3 %vm1056_vm10, %v1252_v4  ;;  %v2734_v4 = vor.u32 %v2940_v1, %v2731_v17  ;;  %v2650_v1 = vor.u32 %v2922_v63, %v2649_v62  ;;  %v2920_v17 = vld [vmem:[%s3503_s14 + $0x4c] sm:$0xf]  ;;  %v3804_v62 = vld [vmem:[%s3549_s11] sm:$0xf] }
 0x405   : > { %v2974_v63 = vld [vmem:[%s3555_s8 + $0xf8] sm:$0xff] }
 0x407   : > { %1680 = vmatpush.bf16.msrb.mxu0 %v2730_v0  ;;  %v2646_v0 = vor.u32 %v2919_v59, %v2643_v61 }
 0x40e   : > { %v1221_v5 = vpop.xlane.xlu2 %1220 }
 0x40f   : > { %3077 = vrcp.f32 %v1221_v5  ;;  %v1248_v9 = vand.u32 2147483648, %v1221_v5  ;;  %v1246_v12 = vand.u32 2147483647, %v1221_v5  ;;  %vm1242_vm11 = vweird.f32 %v1221_v5 }
 0x411   : > { %v1249_v15 = vor.u32 1.1754944e-38, %v1248_v9  ;;  %vm1247_vm8 = vcmp.eq.f32.partialorder %v1246_v12, 8.507059e+37  ;;  %v2707_v9 = vld [vmem:[%s3503_s14 + $0xd0] sm:$0xf0]  ;;  %v2938_v12 = vld [vmem:[%s3503_s14 + $0xd4] sm:$0xf0] }
 0x415   : > { %v3078_v6 = vpop.eup %3077 }
 0x416   : > { %v1238_v7 = vmul.f32 %v3078_v6, %v1221_v5  ;;  %vm1243_vm9 = vweird.f32 %v3078_v6  ;;  %v2705_v5 = vld [vmem:[%s3503_s14 + $0xc0] sm:$0xf] }
 0x417   : > { %vm1244_vm12 = vmor %vm1242_vm11, %vm1243_vm9 }
 0x418   : > { %v1239_v8 = vsub.f32 1.0, %v1238_v7  ;;  %v2935_v7 = vld [vmem:[%s3503_s14 + $0xc4] sm:$0xf] }
 0x41a   : > { %v1240_v11 = vmul.f32 %v3078_v6, %v1239_v8 }
 0x41c   : > { %v1241_v14 = vadd.f32 %v3078_v6, %v1240_v11  ;;  %v2713_v11 = vld [vmem:[%s3503_s14 + $0xc8] sm:$0xf] }
 0x41e   : > { %v1245_v16 = vsel %vm1244_vm12, %v3078_v6, %v1241_v14  ;;  %v2937_v6 = vld [vmem:[%s3503_s14 + $0xcc] sm:$0xf0]  ;;  %v2710_v14 = vor.u32 %v2935_v7, %v2707_v9 }
 0x41f   : > { %v1250_v18 = vsel %vm1247_vm8, %v1249_v15, %v1245_v16  ;;  %v2706_v8 = vor.u32 %v2937_v6, %v2705_v5  ;;  %v2714_v15 = vor.u32 %v2938_v12, %v2713_v11  ;;  %v2936_v16 = vld [vmem:[%s3503_s14 + $0xcc] sm:$0xf]  ;;  %v2625_v6 = vld [vmem:[%s3503_s14 + $0x20] sm:$0xf]  ;;  %v2917_v7 = vld [vmem:[%s3503_s14 + $0x2c] sm:$0xf0] }
 0x420   : > { %v1251_v19 = vmul.f32 %v3678_v27, %v1250_v18  ;;  %v2907_v27 = vld [vmem:[%s3526_s16 + $0x20] sm:$0xff]  ;;  %1667 = vmatpush.bf16.msra.mxu3 %v2710_v14  ;;  %v2626_v9 = vor.u32 %v2917_v7, %v2625_v6  ;;  %v2627_v11 = vld [vmem:[%s3503_s14 + $0x30] sm:$0xf0]  ;;  %v2633_v12 = vld [vmem:[%s3503_s14 + $0x28] sm:$0xf] }
 0x421   : > { %1384 = vmatpush.bf16.msrb.mxu1 %v2907_v27  ;;  %v2715_v18 = vld [vmem:[%s3503_s14 + $0xd8] sm:$0xf0]  ;;  %1653 = vmatpush.bf16.msrb.mxu2 %v2706_v8  ;;  %v2915_v8 = vld [vmem:[%s3503_s14 + $0x24] sm:$0xf]  ;;  %v2918_v14 = vld [vmem:[%s3503_s14 + $0x34] sm:$0xf0] }
 0x422   : > { %v1253_v20 = vpack.c.bf16 %v1251_v19, %v1251_v19  ;;  %v2718_v19 = vor.u32 %v2936_v16, %v2715_v18  ;;  %1681 = vmatpush.bf16.msrb.mxu0 %v2714_v15  ;;  %v2699_v27 = vld [vmem:[%s3503_s14 + $0xb8] sm:$0xf0]  ;;  %v2630_v16 = vor.u32 %v2915_v8, %v2627_v11  ;;  %v2634_v18 = vor.u32 %v2918_v14, %v2633_v12 }
 0x423   : > { %v2958_v11 = vld [vmem:[%s3555_s8 + $0x78] sm:$0xff]  ;;  %v1484_v12 = vperm.slane %v3804_v62, 0  ;;  %v1485_v14 = vperm.slane %v3804_v62, 1 }
 0x424   : > { %2574 = vmatmul.msk.bf16.vlgmr.msra.gmra.mxu0 %vm1056_vm10, %v1253_v20  ;;  %v2689_v20 = vld [vmem:[%s3503_s14 + $0xa0] sm:$0xf] }
 0x425   : > { %1385 = vmatpush.bf16.msrb.mxu1 %v2906_v31  ;;  %v2702_v31 = vor.u32 %v2932_v30, %v2699_v27  ;;  %v2617_v30 = vld [vmem:[%s3503_s14 + $0x8] sm:$0xf]  ;;  %v2914_v27 = vld [vmem:[%s3503_s14 + $0x14] sm:$0xf0] }
 0x429   : > { %1386 = vmatpush.bf16.msrb.mxu1 %v2905_v32  ;;  %v2673_v32 = vld [vmem:[%s3503_s14 + $0x80] sm:$0xf] }
 0x42d   : > { %1387 = vmatpush.bf16.msrb.mxu1 %v2904_v33  ;;  %v2929_v33 = vld [vmem:[%s3503_s14 + $0x8c] sm:$0xf0] }
 0x42f   : > { %v1123_v21 = vpop.f32.mrf.mxu3 }
 0x431   : > { %1388 = vmatpush.bf16.msrb.mxu1 %v2903_v37  ;;  %v2681_v37 = vld [vmem:[%s3503_s14 + $0x88] sm:$0xf] }
 0x432   : > { %v1142_v22 = vpop.f32.mrf.mxu0 }
 0x435   : > { %1694 = vmatpush.bf16.msra.mxu1 %v2734_v4  ;;  %v2651_v4 = vld [vmem:[%s3503_s14 + $0x58] sm:$0xf0] }
 0x436   : > { %v2654_v5 = vor.u32 %v2920_v17, %v2651_v4  ;;  %v2965_v17 = vld [vmem:[%s3555_s8 + $0xb0] sm:$0xff] }
 0x437   : > { %v1125_v23 = vpop.f32.mrf.mxu3  ;;  %v2973_v4 = vld [vmem:[%s3555_s8 + $0xf0] sm:$0xff] }
 0x439   : > { %1695 = vmatpush.bf16.msra.mxu1 %v2718_v19  ;;  %v2916_v19 = vld [vmem:[%s3503_s14 + $0x2c] sm:$0xf] }
 0x43a   : > { %v1144_v24 = vpop.f32.mrf.mxu0 }
 0x43b   : > { %v2691_v24 = vld [vmem:[%s3503_s14 + $0xb0] sm:$0xf0] }
 0x43d   : > { %1696 = vmatpush.bf16.msra.mxu1 %v2702_v31  ;;  %v2912_v31 = vld [vmem:[%s3503_s14 + $0xc] sm:$0xf] }
 0x487   : > { %v1274_v25 = vpop.f32.mrf.mxu3 }
 0x48f   : > { %v1276_v29 = vpop.f32.mrf.mxu3 }
 0x4a1   : > { %v1298_v34 = vpop.f32.mrf.mxu0 }
 0x4a2   : > { %v3046_v35 = vpack.i.bf16 %v1298_v34, %v1274_v25  ;;  %v2697_v25 = vld [vmem:[%s3503_s14 + $0xa8] sm:$0xf]  ;;  %v2927_v34 = vld [vmem:[%s3503_s14 + $0x84] sm:$0xf] }
 0x4a3   : > { %v2698_v29 = vor.u32 %v2934_v26, %v2697_v25  ;;  %v2911_v25 = vld [vmem:[%s3503_s14 + $0x4] sm:$0xf]  ;;  %v2611_v26 = vld [vmem:[%s3503_s14 + $0x10] sm:$0xf0] }
 0x4a4   : > { %3047 = vrot.lane.b32.xlu2 %v3046_v35, %s3290_s15  ;;  %v2674_v35 = vor.u32 %v2929_v33, %v2673_v32  ;;  %v2618_v33 = vor.u32 %v2914_v27, %v2617_v30  ;;  %v2971_v30 = vld [vmem:[%s3555_s8 + $0xe0] sm:$0xff] }
 0x4a5   : > { %1682 = vmatpush.bf16.msrb.mxu0 %v2698_v29  ;;  %v2614_v29 = vor.u32 %v2911_v25, %v2611_v26  ;;  %v2957_v25 = vld [vmem:[%s3555_s8 + $0x70] sm:$0xff] }
 0x4a9   : > { %v1300_v36 = vpop.f32.mrf.mxu0 }
 0x4aa   : > { %v2675_v36 = vld [vmem:[%s3503_s14 + $0x90] sm:$0xf0] }
 0x4fe   : > { %v3048_v38 = vpop.permute.xlu2 %3047 }
 0x4ff   : > { %v3050_v39 = vunpack.i.h.bf16 %v3048_v38  ;;  %v3049_v40 = vunpack.i.l.bf16 %v3048_v38  ;;  %v2930_v38 = vld [vmem:[%s3503_s14 + $0x94] sm:$0xf0] }
 0x501   : > { %v1310_v41 = vsel %vm1017_vm7, %v1123_v21, %v3049_v40  ;;  %v1311_v42 = vsel %vm1017_vm7, %v1142_v22, %v3050_v39  ;;  %v2933_v21 = vld [vmem:[%s3503_s14 + $0xac] sm:$0xf0]  ;;  %v2931_v22 = vld [vmem:[%s3503_s14 + $0xa4] sm:$0xf]  ;;  %v2678_v39 = vor.u32 %v2927_v34, %v2675_v36  ;;  %v2682_v40 = vor.u32 %v2930_v38, %v2681_v37  ;;  %v2619_v34 = vld [vmem:[%s3503_s14 + $0x18] sm:$0xf0] }
 0x502   : > { %v1312_v43 = vpack.c.bf16 %v1311_v42, %v1310_v41  ;;  %v2690_v23 = vor.u32 %v2933_v21, %v2689_v20  ;;  %v2694_v28 = vor.u32 %v2931_v22, %v2691_v24  ;;  %v2928_v41 = vld [vmem:[%s3503_s14 + $0x8c] sm:$0xf]  ;;  %v2683_v42 = vld [vmem:[%s3503_s14 + $0x98] sm:$0xf0]  ;;  %v2609_v21 = vld [vmem:[%s3503_s14] sm:$0xf] }
 0x503   : > { %1683 = vmatpush.bf16.msrb.mxu0 %v2682_v40  ;;  %v2635_v20 = vld [vmem:[%s3503_s14 + $0x38] sm:$0xf0]  ;;  %v2913_v24 = vld [vmem:[%s3503_s14 + $0xc] sm:$0xf0] }
 0x504   : > { %1389 = vmatmul.bf16.vlgmr.msrb.gmra.mxu1 %v1312_v43  ;;  %1654 = vmatpush.bf16.msrb.mxu2 %v2690_v23  ;;  %v2686_v43 = vor.u32 %v2928_v41, %v2683_v42  ;;  %v2638_v23 = vor.u32 %v2916_v19, %v2635_v20  ;;  %v2972_v19 = vld [vmem:[%s3555_s8 + $0xe8] sm:$0xff] }
 0x505   : > { %1668 = vmatpush.bf16.msra.mxu3 %v2694_v28  ;;  %v2610_v28 = vor.u32 %v2913_v24, %v2609_v21  ;;  %v2949_v24 = vld [vmem:[%s3555_s8 + $0x30] sm:$0xff] }
 0x506   : > { %1697 = vmatpush.bf16.msra.mxu1 %v2686_v43 }
 0x508   : > { %1655 = vmatpush.bf16.msrb.mxu2 %v2674_v35  ;;  %v2622_v35 = vor.u32 %v2912_v31, %v2619_v34 }
 0x509   : > { %1669 = vmatpush.bf16.msra.mxu3 %v2678_v39 }
 0x581   : > { %v1390_v45 = vpop.f32.mrf.mxu1 }
 0x582   : > { %v1391_v46 = vadd.f32 %v3053_v44, %v1390_v45  ;;  %v2925_v45 = vld [vmem:[%s3503_s14 + $0x6c] sm:$0xf0] }
 0x584   : > { %v3706_v47 = vadd.f32 %v1391_v46, %v3564_v2  ;;  %v2923_v46 = vld [vmem:[%s3503_s14 + $0x64] sm:$0xf] }
 0x586   : > { %1399 = vadd.xlane.f32.xlu0 %v3706_v47 }
 0x589   : > { %v1392_v48 = vpop.f32.mrf.mxu1 }
 0x58a   : > { %v1393_v49 = vadd.f32 %v3053_v44, %v1392_v48  ;;  %v2657_v44 = vld [vmem:[%s3503_s14 + $0x60] sm:$0xf] }
 0x58b   : > { %v2658_v48 = vor.u32 %v2925_v45, %v2657_v44 }
 0x58c   : > { %v3710_v50 = vadd.f32 %v1393_v49, %v3567_v3  ;;  %v2659_v49 = vld [vmem:[%s3503_s14 + $0x70] sm:$0xf0] }
 0x58d   : > { %1656 = vmatpush.bf16.msrb.mxu2 %v2658_v48 }
 0x58e   : > { %1401 = vadd.xlane.f32.xlu1 %v3710_v50 }
 0x591   : > { %1657 = vmatpush.bf16.msrb.mxu2 %v2642_v60 }
 0x595   : > { %1658 = vmatpush.bf16.msrb.mxu2 %v2626_v9  ;;  %v2950_v9 = vld [vmem:[%s3555_s8 + $0x38] sm:$0xff] }
 0x599   : > { %1659 = vmatpush.bf16.msrb.mxu2 %v2610_v28 }
 0x59d   : > { %2136 = vmatpush.bf16.msra.mxu2 %v2950_v9 }
 0x5a1   : > { %2137 = vmatpush.bf16.msra.mxu2 %v2949_v24 }
 0x5f9   : > { %v1400_v51 = vpop.xlane.xlu0 %1399 }
 0x5fa   : > { %v1403_v52 = vmul.f32 %v1400_v51, %v3570_v10  ;;  %v2665_v51 = vld [vmem:[%s3503_s14 + $0x68] sm:$0xf] }
 0x5fc   : > { %v3715_v2 = vsub.f32 %v3706_v47, %v1403_v52  ;;  %v2926_v52 = vld [vmem:[%s3503_s14 + $0x74] sm:$0xf0] }
 0x5fe   : > { %v1407_v53 = vmul.f32 %v3715_v2, %v3715_v2 }
 0x600   : > { %1409 = vadd.xlane.f32.xlu2 %v1407_v53  ;;  %v2662_v53 = vor.u32 %v2923_v46, %v2659_v49 }
 0x601   : > { %v1402_v54 = vpop.xlane.xlu1 %1401 }
 0x602   : > { %v1404_v3 = vmul.f32 %v1402_v54, %v3570_v10  ;;  %v2666_v54 = vor.u32 %v2926_v52, %v2665_v51  ;;  %1670 = vmatpush.bf16.msra.mxu3 %v2662_v53 }
 0x604   : > { %v3721_v55 = vsub.f32 %v3710_v50, %v1404_v3  ;;  %v2924_v3 = vld [vmem:[%s3503_s14 + $0x6c] sm:$0xf]  ;;  %1684 = vmatpush.bf16.msrb.mxu0 %v2666_v54  ;;  %v3054_v54 = vld [vmem:[%s711_s27] ss:$0 sm:$0xff] }
 0x606   : > { %v1408_v56 = vmul.f32 %v3721_v55, %v3721_v55  ;;  %1671 = vmatpush.bf16.msra.mxu3 %v2646_v0  ;;  %v1486_v0 = vperm.slane %v3804_v62, 2 }
 0x608   : > { %1411 = vadd.xlane.f32.xlu0 %v1408_v56  ;;  %v2667_v56 = vld [vmem:[%s3503_s14 + $0x78] sm:$0xf0]  ;;  %1685 = vmatpush.bf16.msrb.mxu0 %v2650_v1  ;;  %v1487_v1 = vperm.slane %v3804_v62, 3  ;;  %v2952_v62 = vld [vmem:[%s3555_s8 + $0x48] sm:$0xff] }
 0x609   : > { %v2670_v57 = vor.u32 %v2924_v3, %v2667_v56 }
 0x60a   : > { %1672 = vmatpush.bf16.msra.mxu3 %v2630_v16 }
 0x60b   : > { %1698 = vmatpush.bf16.msra.mxu1 %v2670_v57 }
 0x60c   : > { %1686 = vmatpush.bf16.msrb.mxu0 %v2634_v18  ;;  %v2964_v18 = vld [vmem:[%s3555_s8 + $0xa8] sm:$0xff] }
 0x60e   : > { %1673 = vmatpush.bf16.msra.mxu3 %v2614_v29  ;;  %v2963_v29 = vld [vmem:[%s3555_s8 + $0xa0] sm:$0xff] }
 0x60f   : > { %1699 = vmatpush.bf16.msra.mxu1 %v2654_v5 }
 0x610   : > { %1687 = vmatpush.bf16.msrb.mxu0 %v2618_v33 }
 0x612   : > { %2150 = vmatpush.bf16.msrb.mxu3 %v2958_v11 }
 0x613   : > { %1700 = vmatpush.bf16.msra.mxu1 %v2638_v23 }
 0x616   : > { %2151 = vmatpush.bf16.msrb.mxu3 %v2957_v25 }
 0x617   : > { %1701 = vmatpush.bf16.msra.mxu1 %v2622_v35 }
 0x61b   : > { %2178 = vmatpush.bf16.msrb.mxu1 %v2974_v63 }
 0x61f   : > { %2179 = vmatpush.bf16.msrb.mxu1 %v2973_v4  ;;  %v2953_v4 = vld [vmem:[%s3555_s8 + $0x50] sm:$0xff] }
 0x623   : > { %2180 = vmatpush.bf16.msrb.mxu1 %v2972_v19 }
 0x627   : > { %2181 = vmatpush.bf16.msrb.mxu1 %v2971_v30 }
 0x673   : > { %v1410_v15 = vpop.xlane.xlu2 %1409 }
 0x674   : > { %v1413_v22 = vmul.f32 %v1410_v15, %v3570_v10 }
 0x676   : > { %v1415_v32 = vadd.f32 1e-05, %v1413_v22 }
 0x678   : > { %3079 = vrsqrt.f32 %v1415_v32  ;;  %vm1423_vm10 = vweird.f32 %v1415_v32 }
 0x67b   : > { %v1412_v36 = vpop.xlane.xlu0 %1411 }
 0x67c   : > { %v1414_v37 = vmul.f32 %v1412_v36, %v3570_v10  ;;  %v2948_v36 = vld [vmem:[%s3555_s8 + $0x28] sm:$0xff] }
 0x67d   : > { %2138 = vmatpush.bf16.msra.mxu2 %v2948_v36 }
 0x67e   : > { %v3080_v38 = vpop.eup %3079  ;;  %v1416_v39 = vadd.f32 1e-05, %v1414_v37  ;;  %v2956_v37 = vld [vmem:[%s3555_s8 + $0x68] sm:$0xff] }
 0x67f   : > { %v1418_v40 = vmul.f32 %v3080_v38, %v1415_v32  ;;  %vm1424_vm7 = vweird.f32 %v3080_v38  ;;  %2152 = vmatpush.bf16.msrb.mxu3 %v2956_v37 }
 0x680   : > { %3081 = vrsqrt.f32 %v1416_v39  ;;  %vm1425_vm13 = vmor %vm1423_vm10, %vm1424_vm7  ;;  %vm1433_vm15 = vweird.f32 %v1416_v39 }
 0x681   : > { %v1419_v41 = vmul.f32 %v3080_v38, %v1418_v40 }
 0x683   : > { %v1420_v42 = vmul.f32 0.5, %v1419_v41 }
 0x685   : > { %v1421_v43 = vsub.f32 1.5, %v1420_v42  ;;  %v2962_v42 = vld [vmem:[%s3555_s8 + $0x98] sm:$0xff] }
 0x686   : > { %v3082_v44 = vpop.eup %3081 }
 0x687   : > { %v1422_v45 = vmul.f32 %v3080_v38, %v1421_v43  ;;  %v1428_v46 = vmul.f32 %v3082_v44, %v1416_v39  ;;  %vm1434_vm14 = vweird.f32 %v3082_v44  ;;  %v2970_v43 = vld [vmem:[%s3555_s8 + $0xd8] sm:$0xff] }
 0x688   : > { %vm1435_vm0 = vmor %vm1433_vm15, %vm1434_vm14  ;;  %2182 = vmatpush.bf16.msrb.mxu1 %v2970_v43 }
 0x689   : > { %v1429_v48 = vmul.f32 %v3082_v44, %v1428_v46  ;;  %v1426_v49 = vsel %vm1425_vm13, %v3080_v38, %v1422_v45 }
 0x68a   : > { %v1437_v53 = vmul.f32 %v1426_v49, %v3715_v2  ;;  %v3055_v2 = vld [vmem:[%s714_s3] ss:$0 sm:$0xff]  ;;  %v2955_v49 = vld [vmem:[%s3555_s8 + $0x60] sm:$0xff] }
 0x68b   : > { %v1430_v51 = vmul.f32 0.5, %v1429_v48  ;;  %v2947_v48 = vld [vmem:[%s3555_s8 + $0x20] sm:$0xff]  ;;  %2153 = vmatpush.bf16.msrb.mxu3 %v2955_v49 }
 0x68c   : > { %v1442_v13 = vmul.f32 %v3054_v54, %v1437_v53  ;;  %2139 = vmatpush.bf16.msra.mxu2 %v2947_v48 }
 0x68d   : > { %v1431_v52 = vsub.f32 1.5, %v1430_v51 }
 0x68e   : > { %v1447_v59 = vadd.f32 %v3055_v2, %v1442_v13  ;;  %v2946_v13 = vld [vmem:[%s3555_s8 + $0x18] sm:$0xff] }
 0x68f   : > { %v1432_v3 = vmul.f32 %v3082_v44, %v1431_v52 }
 0x690   : > { %2140 = vmatpush.bf16.msra.mxu2 %v2946_v13 }
 0x691   : > { %v1436_v56 = vsel %vm1435_vm0, %v3082_v44, %v1432_v3 }
 0x692   : > { %v1438_v57 = vmul.f32 %v1436_v56, %v3721_v55  ;;  %v2966_v55 = vld [vmem:[%s3555_s8 + $0xb8] sm:$0xff]  ;;  %v2961_v56 = vld [vmem:[%s3555_s8 + $0x90] sm:$0xff] }
 0x693   : > { %2164 = vmatpush.bf16.msra.mxu0 %v2966_v55 }
 0x694   : > { %v1443_v58 = vmul.f32 %v3054_v54, %v1438_v57  ;;  %v2969_v57 = vld [vmem:[%s3555_s8 + $0xd0] sm:$0xff] }
 0x695   : > { %2183 = vmatpush.bf16.msrb.mxu1 %v2969_v57 }
 0x696   : > { %v1448_v60 = vadd.f32 %v3055_v2, %v1443_v58  ;;  %v2954_v2 = vld [vmem:[%s3555_s8 + $0x58] sm:$0xff] }
 0x697   : > { %2165 = vmatpush.bf16.msra.mxu0 %v2965_v17  ;;  %2154 = vmatpush.bf16.msrb.mxu3 %v2954_v2  ;;  %v2945_v17 = vld [vmem:[%s3555_s8 + $0x10] sm:$0xff] }
 0x698   : > { %v1449_v61 = vpack.c.bf16 %v1448_v60, %v1447_v59  ;;  %2141 = vmatpush.bf16.msra.mxu2 %v2945_v17 }
 0x69a   : > { %1660 = vmatmul.bf16.vlgmr.msrb.gmra.mxu2 %v1449_v61  ;;  %1674 = vmatmul.bf16.vlgmr.msra.gmra.mxu3 %v1449_v61 }
 0x69b   : > { %1688 = vmatmul.bf16.vlgmr.msrb.gmra.mxu0 %v1449_v61  ;;  %1702 = vmatmul.bf16.vlgmr.msra.gmra.mxu1 %v1449_v61  ;;  %v2960_v61 = vld [vmem:[%s3555_s8 + $0x88] sm:$0xff] }
 0x69c   : > { %2166 = vmatpush.bf16.msra.mxu0 %v2964_v18  ;;  %2155 = vmatpush.bf16.msrb.mxu3 %v2953_v4 }
 0x6a0   : > { %2167 = vmatpush.bf16.msra.mxu0 %v2963_v29  ;;  %2156 = vmatpush.bf16.msrb.mxu3 %v2952_v62 }
 0x6a4   : > { %2168 = vmatpush.bf16.msra.mxu0 %v2962_v42 }
 0x6a8   : > { %2169 = vmatpush.bf16.msra.mxu0 %v2961_v56 }
 0x6ac   : > { %2170 = vmatpush.bf16.msra.mxu0 %v2960_v61 }
 0x718   : > { %v1689_v5 = vpop.f32.mrf.mxu0  ;;  %v1703_v6 = vpop.f32.mrf.mxu1 }
 0x719   : > { %v3812_v7 = vadd.f32 %v1689_v5, %v1486_v0  ;;  %v3814_v8 = vadd.f32 %v1703_v6, %v1487_v1 }
 0x71b   : > { %v2737_v15 = vmul.f32 -1.702, %v3812_v7  ;;  %v2738_v16 = vmul.f32 -1.702, %v3814_v8 }
 0x71d   : > { %v1728_v20 = vmul.f32 1.442695, %v2737_v15  ;;  %v1730_v21 = vmul.f32 1.442695, %v2738_v16  ;;  %v1661_v22 = vpop.f32.mrf.mxu2  ;;  %v1675_v23 = vpop.f32.mrf.mxu3  ;;  %v2959_v15 = vld [vmem:[%s3555_s8 + $0x80] sm:$0xff] }
 0x71e   : > { %v3826_v26 = vadd.f32 %v1661_v22, %v1484_v12  ;;  %v3830_v28 = vadd.f32 %v1675_v23, %v1485_v14  ;;  %v2967_v16 = vld [vmem:[%s3555_s8 + $0xc0] sm:$0xff]  ;;  %2171 = vmatpush.bf16.msra.mxu0 %v2959_v15  ;;  %v2944_v23 = vld [vmem:[%s3555_s8 + $0x8] sm:$0xff] }
 0x71f   : > { %3083 = vpow2.f32 %v1728_v20  ;;  %2142 = vmatpush.bf16.msra.mxu2 %v2944_v23 }
 0x720   : > { %3085 = vpow2.f32 %v1730_v21  ;;  %v2735_v27 = vmul.f32 -1.702, %v3826_v26  ;;  %v2736_v31 = vmul.f32 -1.702, %v3830_v28  ;;  %v1691_v32 = vpop.f32.mrf.mxu0  ;;  %v1705_v33 = vpop.f32.mrf.mxu1 }
 0x721   : > { %v3836_v34 = vadd.f32 %v1691_v32, %v1486_v0  ;;  %v3838_v35 = vadd.f32 %v1705_v33, %v1487_v1  ;;  %v2968_v0 = vld [vmem:[%s3555_s8 + $0xc8] sm:$0xff]  ;;  %v2951_v32 = vld [vmem:[%s3555_s8 + $0x40] sm:$0xff] }
 0x722   : > { %v1724_v38 = vmul.f32 1.442695, %v2735_v27  ;;  %v1726_v39 = vmul.f32 1.442695, %v2736_v31  ;;  %2184 = vmatpush.bf16.msrb.mxu1 %v2968_v0  ;;  %v2943_v31 = vld [vmem:[%s3555_s8] sm:$0xff]  ;;  %2157 = vmatpush.bf16.msrb.mxu3 %v2951_v32  ;;  %s4113_s8 = sld [smem:[#allocation23_spill]] (!%p2871_p10) }
 0x723   : > { %v2741_v40 = vmul.f32 -1.702, %v3836_v34  ;;  %v2742_v41 = vmul.f32 -1.702, %v3838_v35  ;;  %2143 = vmatpush.bf16.msra.mxu2 %v2943_v31 }
 0x724   : > { %3087 = vpow2.f32 %v1724_v38 }
 0x725   : > { %v3084_v44 = vpop.eup %3083  ;;  %v1736_v45 = vmul.f32 1.442695, %v2741_v40  ;;  %v1663_v46 = vpop.f32.mrf.mxu2  ;;  %3089 = vpow2.f32 %v1726_v39  ;;  %v1738_v53 = vmul.f32 1.442695, %v2742_v41 }
 0x726   : > { %v3086_v51 = vpop.eup %3085  ;;  %v3848_v52 = vadd.f32 1.0, %v3084_v44  ;;  %v3850_v54 = vadd.f32 %v1663_v46, %v1484_v12  ;;  %v1677_v63 = vpop.f32.mrf.mxu3  ;;  %2185 = vmatpush.bf16.msrb.mxu1 %v2967_v16 }
 0x727   : > { %v3852_v3 = vadd.f32 1.0, %v3086_v51  ;;  %3091 = vpow2.f32 %v1736_v45  ;;  %v3876_v12 = vadd.f32 %v1677_v63, %v1485_v14 }
 0x728   : > { %3093 = vrcp.f32 %v3848_v52  ;;  %v2739_v59 = vmul.f32 -1.702, %v3850_v54  ;;  %v1787_v27 = vand.u32 2147483647, %v3848_v52  ;;  %v1789_v33 = vand.u32 2147483648, %v3848_v52 }
 0x729   : > { %3095 = vrcp.f32 %v3852_v3  ;;  %v2740_v24 = vmul.f32 -1.702, %v3876_v12  ;;  %v1802_v36 = vand.u32 2147483647, %v3852_v3  ;;  %v1804_v37 = vand.u32 2147483648, %v3852_v3 }
 0x72a   : > { %v3088_v58 = vpop.eup %3087  ;;  %3097 = vpow2.f32 %v1738_v53  ;;  %v1732_v6 = vmul.f32 1.442695, %v2739_v59  ;;  %vm1783_vm2 = vweird.f32 %v3848_v52  ;;  %vm3909_vm3 = vcmp.eq.f32.partialorder %v1787_v27, 8.507059e+37 }
 0x72b   : > { %v3861_v60 = vadd.f32 1.0, %v3088_v58  ;;  %v3090_v55 = vpop.eup %3089  ;;  %v1734_v38 = vmul.f32 1.442695, %v2740_v24  ;;  %vm1798_vm4 = vweird.f32 %v3852_v3  ;;  %v1790_v45 = vor.u32 1.1754944e-38, %v1789_v33 }
 0x72c   : > { %v3882_v21 = vadd.f32 1.0, %v3090_v55  ;;  %vm3914_vm5 = vcmp.eq.f32.partialorder %v1802_v36, 8.507059e+37  ;;  %v1805_v48 = vor.u32 1.1754944e-38, %v1804_v37 }
 0x72d   : > { %v3092_v1 = vpop.eup %3091  ;;  %3099 = vrcp.f32 %v3861_v60  ;;  %v1759_v61 = vand.u32 2147483648, %v3861_v60  ;;  %v1757_v37 = vand.u32 2147483647, %v3861_v60 }
 0x72e   : > { %v3867_v5 = vpop.eup %3093  ;;  %v3884_v22 = vadd.f32 1.0, %v3092_v1  ;;  %3101 = vpow2.f32 %v1732_v6 }
 0x72f   : > { %v3869_v9 = vpop.eup %3095  ;;  %v1779_v11 = vmul.f32 %v3867_v5, %v3848_v52  ;;  %vm1784_vm1 = vweird.f32 %v3867_v5 }
 0x730   : > { %v3098_v18 = vpop.eup %3097  ;;  %v1794_v19 = vmul.f32 %v3869_v9, %v3852_v3  ;;  %3103 = vrcp.f32 %v3884_v22  ;;  %vm3921_vm6 = vmor %vm1783_vm2, %vm1784_vm1  ;;  %vm1799_vm9 = vweird.f32 %v3869_v9  ;;  %v1847_v52 = vand.u32 2147483647, %v3884_v22 }
 0x731   : > { %v1780_v20 = vsub.f32 1.0, %v1779_v11  ;;  %v3888_v14 = vadd.f32 1.0, %v3098_v18  ;;  %3105 = vrcp.f32 %v3882_v21  ;;  %vm1843_vm11 = vweird.f32 %v3884_v22  ;;  %vm3946_vm8 = vmor %vm1798_vm4, %vm1799_vm9 }
 0x732   : > { %v1795_v29 = vsub.f32 1.0, %v1794_v19  ;;  %v1849_v55 = vand.u32 2147483648, %v3884_v22  ;;  %vm3951_vm10 = vcmp.eq.f32.partialorder %v1847_v52, 8.507059e+37  ;;  %vm1753_vm1 = vweird.f32 %v3861_v60 }
 0x733   : > { %v1781_v25 = vmul.f32 %v3867_v5, %v1780_v20  ;;  %v3893_v30 = vpop.eup %3099  ;;  %3107 = vrcp.f32 %v3888_v14  ;;  %v1864_v3 = vand.u32 2147483648, %v3888_v14  ;;  %v1862_v23 = vand.u32 2147483647, %v3888_v14 }
 0x734   : > { %v3102_v39 = vpop.eup %3101  ;;  %v1796_v41 = vmul.f32 %v3869_v9, %v1795_v29  ;;  %v1749_v42 = vmul.f32 %v3893_v30, %v3861_v60  ;;  %3109 = vpow2.f32 %v1734_v38  ;;  %vm1754_vm7 = vweird.f32 %v3893_v30 }
 0x735   : > { %v1782_v40 = vadd.f32 %v3867_v5, %v1781_v25  ;;  %v3927_v56 = vadd.f32 1.0, %v3102_v39  ;;  %v1850_v19 = vor.u32 1.1754944e-38, %v1849_v55  ;;  %vm1858_vm15 = vweird.f32 %v3888_v14 }
 0x736   : > { %v3104_v43 = vpop.eup %3103  ;;  %v1797_v2 = vadd.f32 %v3869_v9, %v1796_v41  ;;  %v1750_v58 = vsub.f32 1.0, %v1749_v42  ;;  %v1865_v36 = vor.u32 1.1754944e-38, %v1864_v3  ;;  %vm1863_vm2 = vcmp.eq.f32.partialorder %v1862_v23, 8.507059e+37 }
 0x737   : > { %v1839_v49 = vmul.f32 %v3104_v43, %v3884_v22  ;;  %v3919_v51 = vpop.eup %3105  ;;  %v1786_v13 = vsel %vm3921_vm6, %v3867_v5, %v1782_v40  ;;  %vm1844_vm12 = vweird.f32 %v3104_v43  ;;  %3111 = vrcp.f32 %v3927_v56 }
 0x738   : > { %v1764_v0 = vmul.f32 %v3919_v51, %v3882_v21  ;;  %v1791_v17 = vsel %vm3909_vm3, %v1790_v45, %v1786_v13  ;;  %v1801_v11 = vsel %vm3946_vm8, %v3869_v9, %v1797_v2  ;;  %v1751_v15 = vmul.f32 %v3893_v30, %v1750_v58  ;;  %vm1845_vm13 = vmor %vm1843_vm11, %vm1844_vm12 }
 0x739   : > { %v3108_v57 = vpop.eup %3107  ;;  %v1840_v59 = vsub.f32 1.0, %v1839_v49  ;;  %v1870_v9 = vmul.f32 %v1791_v17, %v3812_v7  ;;  %v1806_v29 = vsel %vm3914_vm5, %v1805_v48, %v1801_v11  ;;  %vm3981_vm3 = vmor %vm1753_vm1, %vm1754_vm7  ;;  %v1760_v60 = vor.u32 1.1754944e-38, %v1759_v61 }
 0x73a   : > { %v1854_v63 = vmul.f32 %v3108_v57, %v3888_v14  ;;  %v3110_v18 = vpop.eup %3109  ;;  %vm1859_vm14 = vweird.f32 %v3108_v57  ;;  %v1765_v62 = vsub.f32 1.0, %v1764_v0  ;;  %v1752_v32 = vadd.f32 %v3893_v30, %v1751_v15 }
 0x73b   : > { %v1841_v1 = vmul.f32 %v3104_v43, %v1840_v59  ;;  %v3964_v25 = vadd.f32 1.0, %v3110_v18  ;;  %vm1860_vm0 = vmor %vm1858_vm15, %vm1859_vm14  ;;  %v1871_v41 = vmul.f32 %v1806_v29, %v3814_v8  ;;  %v1819_v45 = vand.u32 2147483648, %v3927_v56 }
 0x73c   : > { %v1855_v6 = vsub.f32 1.0, %v1854_v63  ;;  %v1766_v38 = vmul.f32 %v3919_v51, %v1765_v62  ;;  %v1756_v44 = vsel %vm3981_vm3, %v3893_v30, %v1752_v32  ;;  %v1817_v8 = vand.u32 2147483647, %v3927_v56 }
 0x73d   : > { %v1842_v16 = vadd.f32 %v3104_v43, %v1841_v1  ;;  %v3112_v31 = vpop.eup %3111  ;;  %3113 = vrcp.f32 %v3964_v25  ;;  %vm1758_vm5 = vcmp.eq.f32.partialorder %v1757_v37, 8.507059e+37  ;;  %vm1769_vm6 = vweird.f32 %v3919_v51 }
 0x73e   : > { %v1856_v20 = vmul.f32 %v3108_v57, %v1855_v6  ;;  %v1809_v7 = vmul.f32 %v3112_v31, %v3927_v56  ;;  %vm1814_vm4 = vweird.f32 %v3112_v31  ;;  %v1767_v53 = vadd.f32 %v3919_v51, %v1766_v38 }
 0x73f   : > { %v1846_v24 = vsel %vm1845_vm13, %v3104_v43, %v1842_v16  ;;  %vm1813_vm9 = vweird.f32 %v3927_v56  ;;  %vm1768_vm11 = vweird.f32 %v3882_v21  ;;  %v1820_v13 = vor.u32 1.1754944e-38, %v1819_v45 }
 0x740   : > { %v1851_v22 = vsel %vm3951_vm10, %v1850_v19, %v1846_v24  ;;  %v1857_v27 = vadd.f32 %v3108_v57, %v1856_v20  ;;  %v1810_v43 = vsub.f32 1.0, %v1809_v7  ;;  %vm1815_vm12 = vmor %vm1813_vm9, %vm1814_vm4  ;;  %v1772_v58 = vand.u32 2147483647, %v3882_v21 }
 0x741   : > { %v1874_v33 = vmul.f32 %v1851_v22, %v3836_v34  ;;  %vm3997_vm8 = vmor %vm1768_vm11, %vm1769_vm6  ;;  %vm1818_vm7 = vcmp.eq.f32.partialorder %v1817_v8, 8.507059e+37  ;;  %v1834_v0 = vand.u32 2147483648, %v3964_v25  ;;  %v1832_v4 = vand.u32 2147483647, %v3964_v25 }
 0x742   : > { %v1861_v14 = vsel %vm1860_vm0, %v3108_v57, %v1857_v27  ;;  %v1811_v48 = vmul.f32 %v3112_v31, %v1810_v43  ;;  %v1774_v57 = vand.u32 2147483648, %v3882_v21  ;;  %v1771_v55 = vsel %vm3997_vm8, %v3919_v51, %v1767_v53 }
 0x743   : > { %v1878_v39 = vpack.c.bf16 %v1874_v33, %v1870_v9  ;;  %v1866_v40 = vsel %vm1863_vm2, %v1865_v36, %v1861_v14  ;;  %v3114_v49 = vpop.eup %3113  ;;  %vm1773_vm13 = vcmp.eq.f32.partialorder %v1772_v58, 8.507059e+37  ;;  %vm1828_vm14 = vweird.f32 %v3964_v25  ;;  %v3056_v9 = vld [vmem:[%s721_s24] ss:$0 sm:$0xff] }
 0x744   : > { %v1875_v42 = vmul.f32 %v1866_v40, %v3838_v35  ;;  %v1761_v35 = vsel %vm1758_vm5, %v1760_v60, %v1756_v44  ;;  %v1812_v52 = vadd.f32 %v3112_v31, %v1811_v48  ;;  %v1824_v30 = vmul.f32 %v3114_v49, %v3964_v25 }
 0x745   : > { %2172 = vmatmul.bf16.vlgmr.msra.gmra.mxu0 %v1878_v39  ;;  %v1868_v56 = vmul.f32 %v1761_v35, %v3826_v26  ;;  %vm1829_vm10 = vweird.f32 %v3114_v49  ;;  %v1775_v5 = vor.u32 1.1754944e-38, %v1774_v57  ;;  %v1835_v11 = vor.u32 1.1754944e-38, %v1834_v0 }
 0x746   : > { %v1879_v46 = vpack.c.bf16 %v1875_v42, %v1871_v41  ;;  %v1816_v59 = vsel %vm1815_vm12, %v3112_v31, %v1812_v52  ;;  %v1825_v61 = vsub.f32 1.0, %v1824_v30  ;;  %vm1830_vm15 = vmor %vm1828_vm14, %vm1829_vm10  ;;  %vm1833_vm0 = vcmp.eq.f32.partialorder %v1832_v4, 8.507059e+37 }
 0x747   : > { %v1821_v63 = vsel %vm1818_vm7, %v1820_v13, %v1816_v59  ;;  %v1776_v26 = vsel %vm1773_vm13, %v1775_v5, %v1771_v55 }
 0x748   : > { %2186 = vmatmul.bf16.vlgmr.msrb.gmra.mxu1 %v1879_v46  ;;  %v1872_v1 = vmul.f32 %v1821_v63, %v3850_v54  ;;  %v1826_v17 = vmul.f32 %v3114_v49, %v1825_v61  ;;  %v1869_v54 = vmul.f32 %v1776_v26, %v3830_v28 }
 0x74a   : > { %v1876_v21 = vpack.c.bf16 %v1872_v1, %v1868_v56  ;;  %v1827_v6 = vadd.f32 %v3114_v49, %v1826_v17 }
 0x74c   : > { %v1831_v51 = vsel %vm1830_vm15, %v3114_v49, %v1827_v6  ;;  %2144 = vmatmul.bf16.vlgmr.msra.gmra.mxu2 %v1876_v21 }
 0x74d   : > { %v1836_v15 = vsel %vm1833_vm0, %v1835_v11, %v1831_v51 }
 0x74e   : > { %v1873_v16 = vmul.f32 %v1836_v15, %v3876_v12 }
 0x750   : > { %v1877_v3 = vpack.c.bf16 %v1873_v16, %v1869_v54 }
 0x752   : > { %2158 = vmatmul.bf16.vlgmr.msrb.gmra.mxu3 %v1877_v3 }
 0x7c2   : > { %v2173_v19 = vpop.f32.mrf.mxu0 }
 0x7c5   : > { %v2187_v62 = vpop.f32.mrf.mxu1 }
 0x7ca   : > { %v2175_v31 = vpop.f32.mrf.mxu0 }
 0x7cd   : > { %v2189_v33 = vpop.f32.mrf.mxu1 }
 0x7cf   : > { %v2145_v18 = vpop.f32.mrf.mxu2 }
 0x7d5   : > { %v2159_v20 = vpop.f32.mrf.mxu3 }
 0x7d6   : > { %v2160_v23 = vadd.f32 %v2159_v20, %v2145_v18 }
 0x7d7   : > { %v2147_v29 = vpop.f32.mrf.mxu2 }
 0x7d8   : > { %v2174_v24 = vadd.f32 %v2173_v19, %v2160_v23 }
 0x7da   : > { %v2188_v25 = vadd.f32 %v2187_v62, %v2174_v24 }
 0x7dc   : > { %v2192_v22 = vadd.f32 %v2188_v25, %v3706_v47 }
 0x7dd   : > { %v2161_v28 = vpop.f32.mrf.mxu3 }
 0x7de   : > { %v2198_v27 = vadd.f32 %v3056_v9, %v2192_v22  ;;  %v2162_v12 = vadd.f32 %v2161_v28, %v2147_v29 }
 0x7e0   : > { %2200 = vst [vmem:[#allocation8] sm:$0xff] %v2198_v27  ;;  %v2176_v32 = vadd.f32 %v2175_v31, %v2162_v12 }
 0x7e2   : > { %v2190_v36 = vadd.f32 %v2189_v33, %v2176_v32 }
 0x7e4   : > { %v2193_v14 = vadd.f32 %v2190_v36, %v3710_v50  ;;  %2205 = sbr.rel (%p2871_p10) target bundleno = 2300 (0x8fc), region = 100 }
 0x7e6   : > { %v2199_v7 = vadd.f32 %v3056_v9, %v2193_v14 }
 0x7e8   : > { %2201 = vst [vmem:[#allocation8 + $0x8] sm:$0xff] %v2199_v7 }
 0x7e9   : > { %2208 = vadd.xlane.f32.xlu0 %v2198_v27  ;;  %v3115_v13 = vld [vmem:[%s4113_s8] ss:$0 sm:$0xff] }
 0x7ea   : > { %v3116_v59 = vld [vmem:[%s4114_s5] ss:$0 sm:$0xff] }
 0x7f1   : > { %2210 = vadd.xlane.f32.xlu0 %v2199_v7 }
 0x85c   : > { %v2209_v37 = vpop.xlane.xlu0 %2208 }
 0x85d   : > { %v2212_v47 = vmul.f32 %v2209_v37, %v3570_v10 }
 0x85f   : > { %v2214_v38 = vsub.f32 %v2198_v27, %v2212_v47 }
 0x861   : > { %v2216_v39 = vmul.f32 %v2214_v38, %v2214_v38 }
 0x863   : > { %2218 = vadd.xlane.f32.xlu1 %v2216_v39 }
 0x864   : > { %v2211_v40 = vpop.xlane.xlu0 %2210 }
 0x865   : > { %v2213_v41 = vmul.f32 %v2211_v40, %v3570_v10 }
 0x867   : > { %v2215_v34 = vsub.f32 %v2199_v7, %v2213_v41 }
 0x869   : > { %v2217_v42 = vmul.f32 %v2215_v34, %v2215_v34 }
 0x86b   : > { %2220 = vadd.xlane.f32.xlu1 %v2217_v42 }
 0x8d6   : > { %v2219_v50 = vpop.xlane.xlu1 %2218 }
 0x8d7   : > { %v2222_v43 = vmul.f32 %v2219_v50, %v3570_v10 }
 0x8d9   : > { %v2224_v44 = vadd.f32 1e-05, %v2222_v43 }
 0x8db   : > { %3117 = vrsqrt.f32 %v2224_v44  ;;  %vm2232_vm2 = vweird.f32 %v2224_v44 }
 0x8de   : > { %v2221_v60 = vpop.xlane.xlu1 %2220 }
 0x8df   : > { %v2223_v45 = vmul.f32 %v2221_v60, %v3570_v10 }
 0x8e1   : > { %v3118_v46 = vpop.eup %3117  ;;  %v2225_v48 = vadd.f32 1e-05, %v2223_v45 }
 0x8e2   : > { %v2227_v8 = vmul.f32 %v3118_v46, %v2224_v44  ;;  %vm2233_vm1 = vweird.f32 %v3118_v46 }
 0x8e3   : > { %3119 = vrsqrt.f32 %v2225_v48  ;;  %vm2234_vm3 = vmor %vm2232_vm2, %vm2233_vm1  ;;  %vm2242_vm5 = vweird.f32 %v2225_v48 }
 0x8e4   : > { %v2228_v49 = vmul.f32 %v3118_v46, %v2227_v8 }
 0x8e6   : > { %v2229_v53 = vmul.f32 0.5, %v2228_v49 }
 0x8e8   : > { %v2230_v35 = vsub.f32 1.5, %v2229_v53 }
 0x8e9   : > { %v3120_v52 = vpop.eup %3119 }
 0x8ea   : > { %v2231_v30 = vmul.f32 %v3118_v46, %v2230_v35  ;;  %v2237_v57 = vmul.f32 %v3120_v52, %v2225_v48  ;;  %vm2243_vm4 = vweird.f32 %v3120_v52 }
 0x8eb   : > { %vm2244_vm6 = vmor %vm2242_vm5, %vm2243_vm4 }
 0x8ec   : > { %v2235_v2 = vsel %vm2234_vm3, %v3118_v46, %v2231_v30  ;;  %v2238_v58 = vmul.f32 %v3120_v52, %v2237_v57 }
 0x8ed   : > { %v2246_v10 = vmul.f32 %v2235_v2, %v2214_v38 }
 0x8ee   : > { %v2239_v61 = vmul.f32 0.5, %v2238_v58 }
 0x8ef   : > { %v2251_v56 = vmul.f32 %v3115_v13, %v2246_v10 }
 0x8f0   : > { %v2240_v55 = vsub.f32 1.5, %v2239_v61 }
 0x8f1   : > { %v2256_v63 = vadd.f32 %v3116_v59, %v2251_v56 }
 0x8f2   : > { %v2241_v0 = vmul.f32 %v3120_v52, %v2240_v55 }
 0x8f3   : > { %2258 = vst [vmem:[#allocation8] sm:$0xff] %v2256_v63 }
 0x8f4   : > { %v2245_v1 = vsel %vm2244_vm6, %v3120_v52, %v2241_v0 }
 0x8f5   : > { %v2247_v17 = vmul.f32 %v2245_v1, %v2215_v34 }
 0x8f7   : > { %v2252_v4 = vmul.f32 %v3115_v13, %v2247_v17 }
 0x8f9   : > { %v2257_v5 = vadd.f32 %v3116_v59, %v2252_v4 }
 0x8fb   : > { %2259 = vst [vmem:[#allocation8 + $0x8] sm:$0xff] %v2257_v5 }
 0x8fc PF: > { %p3000_p5 = scmp.eq.s32.totalorder %s3394_s22, 1  ;;  %s3292_s20 = smov [#allocation8]  }
 0x8fd   : > { %s2265_s29 = sshll.u32 %s3292_s20, 4  ;;  %s4115_s13 = sld [smem:[#allocation25_spill]]  ;;  %s2266_s29 = int_to_ptr.vmem [resolvable:$true] %s2265_s29 }
 0x8fe   : > { %s3293_s30 = smov 128   ;;  %s3294_s26 = smov 8  }
 0x903   : > { %s2267_s15 = sshll.u32 %s4115_s13, 4  ;;  %s2268_s15 = int_to_ptr.hbm [resolvable:$true] %s2267_s15 }
 0x904   : > { %2986 = dma.vmem_to_hbm [thread:$0]  (%p3000_p5), %s2266_s29, 256, %s2268_s15, [#allocation4], %s3293_s30, %s3293_s30, %s3294_s26  }
 0x905   : > { %3264 = dma.done.wait (%p3000_p5), [#allocation4], 256  }
 0x906   : > { %3266 = vsyncadd (%p3000_p5), [#allocation4], 4294967040 }
 0x907 PF: > { %s4116_s21 = sld [smem:[#allocation13_spill]]  ;;  %s4119_s18 = smov %s3273_s19 }
 0x908   : > { %s4117_s14 = sld [smem:[#allocation12_spill]] }
 0x909   : > { %s4118_s20 = sld [smem:[#allocation14_spill]] }
 0x90d   : > { %p29_p13 = scmp.ge.s32.totalorder %s4116_s21, 4  }
 0x90e   : > { %s4120_s19 = smov %s4117_s14 }
 0x90f   :  { %31 = sbr.rel (!%p29_p13) target bundleno = 18 (0x12), region = 176 }
 0x914   :  { %2284 = vsyncpa [#allocation3], 1 }
 0x915   :  { %2286 = vsyncpa [#allocation3 + $0x1], 1 }
 0x916   :  { %2287 = vsyncpa [#allocation6], 1 }
 0x917   :  { %2289 = vsyncpa [#allocation6 + $0x1], 1 }
 0x918   :  { %2290 = vsyncpa [#allocation4], 1 }
 0x919   :  { %2292 = vsyncpa [#allocation4 + $0x1], 1 }

</bundles_post_ra>
